<compile_context>
chip_gen: v7x
topology: tpu7x:2x2x1
jax: 0.10.0
libtpu: 0.0.40
codegen_flags: <defaults>
</compile_context>

<pallas_src>
import jax
import jax.numpy as jnp
from jax.experimental import pallas as pl
from jax.experimental.pallas import tpu as pltpu


def _round_up(x, m):
    return ((x + m - 1) // m) * m


def _classifier_head_kernel(x_ref, w1_ref, b1_ref, w2_ref, b2_ref,
                            w3_ref, b3_ref, o_ref):
    # bf16 operands on the MXU, f32 accumulation, bias-add / ReLU in f32.
    x = x_ref[...]
    h1 = jnp.dot(x, w1_ref[...], preferred_element_type=jnp.float32) + b1_ref[...]
    h1 = jnp.maximum(h1, 0.0).astype(w2_ref.dtype)
    h2 = jnp.dot(h1, w2_ref[...], preferred_element_type=jnp.float32) + b2_ref[...]
    h2 = jnp.maximum(h2, 0.0).astype(w3_ref.dtype)
    out = jnp.dot(h2, w3_ref[...], preferred_element_type=jnp.float32) + b3_ref[...]
    o_ref[...] = out.astype(o_ref.dtype)


def fold_batchnorm(w, b, gamma, beta, mean, var, eps=1e-5):
    """Fold eval-mode BatchNorm1d into the preceding Linear (all in f32).

    w: (in, out), b/gamma/beta/mean/var: (out,).
    Returns (w_f, b_f) such that BN(x @ w + b) == x @ w_f + b_f.
    """
    s = gamma / jnp.sqrt(var + eps)
    return w * s[None, :], b * s + (beta - mean * s)


def classifier_head_pallas(feat, w1, b1, w2, b2, w3, b3, *, tile_b=512):
    """Fused Linear->ReLU->Linear->ReLU->Linear head (BN already folded).

    feat: [B, K]; w*: (in, out) layout; b*: (out,).  Returns [B, num_c] logits
    in feat.dtype.
    """
    B, K = feat.shape
    H1 = w1.shape[1]
    H2 = w2.shape[1]
    C = w3.shape[1]
    out_dtype = feat.dtype

    # Lane-dense logits: pad the last Linear to a multiple of 128 output columns
    # so the output tile store is unmasked (slice back below).
    Cp = max(128, _round_up(C, 128))
    if Cp != C:
        w3 = jnp.pad(w3, ((0, 0), (0, Cp - C)))
        b3 = jnp.pad(b3, ((0, Cp - C),))

    # bf16 matmul operands (BN folded in f32 by the caller, cast here); biases
    # stay f32 as (1, F) lane-dense rows.
    cdt = jnp.bfloat16
    xb = feat.astype(cdt)
    w1b, w2b, w3b = w1.astype(cdt), w2.astype(cdt), w3.astype(cdt)
    b1r = b1.reshape(1, H1).astype(jnp.float32)
    b2r = b2.reshape(1, H2).astype(jnp.float32)
    b3r = b3.reshape(1, Cp).astype(jnp.float32)

    # Batch tile: multiple of 16 (bf16 sublane packing).  No host-side padding.
    tm = _round_up(min(tile_b, B), 16)
    # v7x has 2 TensorCores: give the "parallel" batch axis >= 2 steps when the
    # batch is big enough to split; tiny batches keep a single full-batch tile.
    if B > 256 and pl.cdiv(B, tm) < 2:
        tm = _round_up(pl.cdiv(B, 2), 16)
    if tm >= B:
        tm = B  # one tile spanning the whole (small) batch -> full-dim blocks.
    grid = (pl.cdiv(B, tm),)

    # VMEM budget: (conservatively double-buffered) weights/biases + activation
    # and output tiles + f32 intermediates, with headroom.
    w_bytes = (K * H1 + H1 * H2 + H2 * Cp) * 2 + (H1 + H2 + Cp) * 4
    tile_bytes = tm * K * 2 + tm * Cp * jnp.dtype(out_dtype).itemsize
    tmp_bytes = tm * (H1 + H2 + Cp) * 4
    vmem_limit = int(min(2 * (w_bytes + tile_bytes) + tmp_bytes + (8 << 20),
                         96 << 20))

    out = pl.pallas_call(
        _classifier_head_kernel,
        out_shape=jax.ShapeDtypeStruct((B, Cp), out_dtype),
        grid_spec=pltpu.PrefetchScalarGridSpec(
            num_scalar_prefetch=0,
            grid=grid,
            # Note: the weight/bias blocks have constant index_maps, so Pallas
            # only DMAs them once; single-buffering them (pl.Buffered(1)) would
            # save ~1.3 MB of VMEM on v7x but is left off for portability.
            in_specs=[
                pl.BlockSpec((tm, K), lambda i: (i, 0)),    # activation tile
                pl.BlockSpec((K, H1), lambda i: (0, 0)),    # W1 (VMEM-resident)
                pl.BlockSpec((1, H1), lambda i: (0, 0)),    # b1
                pl.BlockSpec((H1, H2), lambda i: (0, 0)),   # W2
                pl.BlockSpec((1, H2), lambda i: (0, 0)),    # b2
                pl.BlockSpec((H2, Cp), lambda i: (0, 0)),   # W3 (col-padded)
                pl.BlockSpec((1, Cp), lambda i: (0, 0)),    # b3
            ],
            out_specs=pl.BlockSpec((tm, Cp), lambda i: (i, 0)),
        ),
        compiler_params=pltpu.CompilerParams(
            # Batch tiles are independent -> megacore-shardable on v7x.
            dimension_semantics=("parallel",),
            vmem_limit_bytes=vmem_limit,
        ),
    )(xb, w1b, b1r, w2b, b2r, w3b, b3r)

    return out[:, :C]


if __name__ == "__main__":
    key = jax.random.PRNGKey(0)
    B = 2            # batch
    dim_k = 1024     # CFormer feature dimension (classifier input)
    num_c = 40       # number of classes
    H1, H2 = 512, 256  # hidden widths fixed by mlp_layers(dim_k, [512, 256])

    ks = jax.random.split(key, 16)
    feat = jax.random.normal(ks[0], (B, dim_k), dtype=jnp.float32)

    # Linear weights stored as (in, out); scaled ~1/sqrt(fan_in) like PyTorch init.
    w1 = jax.random.normal(ks[1], (dim_k, H1), jnp.float32) / jnp.sqrt(dim_k)
    b1 = jax.random.normal(ks[2], (H1,), jnp.float32) * 0.01
    w2 = jax.random.normal(ks[3], (H1, H2), jnp.float32) / jnp.sqrt(H1)
    b2 = jax.random.normal(ks[4], (H2,), jnp.float32) * 0.01
    w3 = jax.random.normal(ks[5], (H2, num_c), jnp.float32) / jnp.sqrt(H2)
    b3 = jax.random.normal(ks[6], (num_c,), jnp.float32) * 0.01

    # Eval-mode BatchNorm1d parameters (running stats).
    g1 = 1.0 + 0.1 * jax.random.normal(ks[7], (H1,), jnp.float32)
    be1 = 0.1 * jax.random.normal(ks[8], (H1,), jnp.float32)
    m1 = 0.1 * jax.random.normal(ks[9], (H1,), jnp.float32)
    v1 = jnp.abs(1.0 + 0.1 * jax.random.normal(ks[10], (H1,), jnp.float32))
    g2 = 1.0 + 0.1 * jax.random.normal(ks[11], (H2,), jnp.float32)
    be2 = 0.1 * jax.random.normal(ks[12], (H2,), jnp.float32)
    m2 = 0.1 * jax.random.normal(ks[13], (H2,), jnp.float32)
    v2 = jnp.abs(1.0 + 0.1 * jax.random.normal(ks[14], (H2,), jnp.float32))

    # Fold BN into the Linears in f32 (eval-mode semantics of the Sequential).
    w1f, b1f = fold_batchnorm(w1, b1, g1, be1, m1, v1)
    w2f, b2f = fold_batchnorm(w2, b2, g2, be2, m2, v2)

    out = classifier_head_pallas(feat, w1f, b1f, w2f, b2f, w3, b3)
    out = jax.block_until_ready(out)

    # Reference A: exactly the math the kernel performs (bf16 operands, f32 acc).
    bf = jnp.bfloat16
    r1 = jnp.maximum(jnp.dot(feat.astype(bf), w1f.astype(bf),
                             preferred_element_type=jnp.float32) + b1f, 0.0)
    r2 = jnp.maximum(jnp.dot(r1.astype(bf), w2f.astype(bf),
                             preferred_element_type=jnp.float32) + b2f, 0.0)
    ref_bf = jnp.dot(r2.astype(bf), w3.astype(bf),
                     preferred_element_type=jnp.float32) + b3

    # Reference B: pure-f32 eval-mode head (module semantics); loose tolerance
    # absorbs the deliberate bf16 cast on the MXU operands.
    h1 = jnp.maximum(feat @ w1f + b1f, 0.0)
    h2 = jnp.maximum(h1 @ w2f + b2f, 0.0)
    ref_f32 = h2 @ w3 + b3

    assert out.shape == (B, num_c), out.shape
    assert out.dtype == feat.dtype, out.dtype
    assert jnp.allclose(out, ref_bf, rtol=2e-2, atol=2e-2), (
        float(jnp.max(jnp.abs(out - ref_bf))))
    assert jnp.allclose(out, ref_f32, rtol=6e-2, atol=6e-2), (
        float(jnp.max(jnp.abs(out - ref_f32))))

    print("KERNEL_OK")
</pallas_src>

<mosaic_0001>
module attributes {stable_mosaic.version = 11 : i64} {
  func.func @_classifier_head_kernel(%arg0: i32, %arg1: memref<2x1024xbf16, #tpu.memory_space<vmem>>, %arg2: memref<1024x512xbf16, #tpu.memory_space<vmem>>, %arg3: memref<1x512xf32, #tpu.memory_space<vmem>>, %arg4: memref<512x256xbf16, #tpu.memory_space<vmem>>, %arg5: memref<1x256xf32, #tpu.memory_space<vmem>>, %arg6: memref<256x128xbf16, #tpu.memory_space<vmem>>, %arg7: memref<1x128xf32, #tpu.memory_space<vmem>>, %arg8: memref<2x128xf32, #tpu.memory_space<vmem>>) attributes {dimension_semantics = [#tpu.dimension_semantics<parallel>], iteration_bounds = array<i64: 1>, scalar_prefetch = 0 : i64, scratch_operands = 0 : i64, tpu.core_type = #tpu.core_type<tc>, window_params = [{transform_indices = @transform_0, window_bounds = array<i64: 2, 1024>}, {pipeline_mode = #tpu.pipeline_mode<synchronous>, transform_indices = @transform_1, window_bounds = array<i64: 1024, 512>}, {pipeline_mode = #tpu.pipeline_mode<synchronous>, transform_indices = @transform_2, window_bounds = array<i64: 1, 512>}, {pipeline_mode = #tpu.pipeline_mode<synchronous>, transform_indices = @transform_3, window_bounds = array<i64: 512, 256>}, {pipeline_mode = #tpu.pipeline_mode<synchronous>, transform_indices = @transform_4, window_bounds = array<i64: 1, 256>}, {pipeline_mode = #tpu.pipeline_mode<synchronous>, transform_indices = @transform_5, window_bounds = array<i64: 256, 128>}, {pipeline_mode = #tpu.pipeline_mode<synchronous>, transform_indices = @transform_6, window_bounds = array<i64: 1, 128>}, {transform_indices = @transform_7, window_bounds = array<i64: 2, 128>}]} {
    %c0 = arith.constant 0 : index
    %c0_0 = arith.constant 0 : index
    %0 = vector.load %arg1[%c0, %c0_0] : memref<2x1024xbf16, #tpu.memory_space<vmem>>, vector<2x1024xbf16>
    %c0_1 = arith.constant 0 : index
    %c0_2 = arith.constant 0 : index
    %1 = vector.load %arg2[%c0_1, %c0_2] : memref<1024x512xbf16, #tpu.memory_space<vmem>>, vector<1024x512xbf16>
    %cst = arith.constant dense<0.000000e+00> : vector<2x512xf32>
    %2 = tpu.matmul %0, %1, %cst {dimension_numbers = #tpu.dot_dimension_numbers<[1], [0], [0], [1], [0, 0, 1, 1], [], []>} : vector<2x1024xbf16>, vector<1024x512xbf16>, vector<2x512xf32> -> vector<2x512xf32>
    %c0_3 = arith.constant 0 : index
    %c0_4 = arith.constant 0 : index
    %3 = vector.load %arg3[%c0_3, %c0_4] : memref<1x512xf32, #tpu.memory_space<vmem>>, vector<1x512xf32>
    %4 = vector.broadcast %3 : vector<1x512xf32> to vector<2x512xf32>
    %5 = arith.addf %2, %4 : vector<2x512xf32>
    %cst_5 = arith.constant 0.000000e+00 : f32
    %6 = vector.broadcast %cst_5 : f32 to vector<2x512xf32>
    %7 = arith.maximumf %5, %6 : vector<2x512xf32>
    %8 = arith.truncf %7 : vector<2x512xf32> to vector<2x512xbf16>
    %c0_6 = arith.constant 0 : index
    %c0_7 = arith.constant 0 : index
    %9 = vector.load %arg4[%c0_6, %c0_7] : memref<512x256xbf16, #tpu.memory_space<vmem>>, vector<512x256xbf16>
    %cst_8 = arith.constant dense<0.000000e+00> : vector<2x256xf32>
    %10 = tpu.matmul %8, %9, %cst_8 {dimension_numbers = #tpu.dot_dimension_numbers<[1], [0], [0], [1], [0, 0, 1, 1], [], []>} : vector<2x512xbf16>, vector<512x256xbf16>, vector<2x256xf32> -> vector<2x256xf32>
    %c0_9 = arith.constant 0 : index
    %c0_10 = arith.constant 0 : index
    %11 = vector.load %arg5[%c0_9, %c0_10] : memref<1x256xf32, #tpu.memory_space<vmem>>, vector<1x256xf32>
    %12 = vector.broadcast %11 : vector<1x256xf32> to vector<2x256xf32>
    %13 = arith.addf %10, %12 : vector<2x256xf32>
    %cst_11 = arith.constant 0.000000e+00 : f32
    %14 = vector.broadcast %cst_11 : f32 to vector<2x256xf32>
    %15 = arith.maximumf %13, %14 : vector<2x256xf32>
    %16 = arith.truncf %15 : vector<2x256xf32> to vector<2x256xbf16>
    %c0_12 = arith.constant 0 : index
    %c0_13 = arith.constant 0 : index
    %17 = vector.load %arg6[%c0_12, %c0_13] : memref<256x128xbf16, #tpu.memory_space<vmem>>, vector<256x128xbf16>
    %cst_14 = arith.constant dense<0.000000e+00> : vector<2x128xf32>
    %18 = tpu.matmul %16, %17, %cst_14 {dimension_numbers = #tpu.dot_dimension_numbers<[1], [0], [0], [1], [0, 0, 1, 1], [], []>} : vector<2x256xbf16>, vector<256x128xbf16>, vector<2x128xf32> -> vector<2x128xf32>
    %c0_15 = arith.constant 0 : index
    %c0_16 = arith.constant 0 : index
    %19 = vector.load %arg7[%c0_15, %c0_16] : memref<1x128xf32, #tpu.memory_space<vmem>>, vector<1x128xf32>
    %20 = vector.broadcast %19 : vector<1x128xf32> to vector<2x128xf32>
    %21 = arith.addf %18, %20 : vector<2x128xf32>
    %c0_17 = arith.constant 0 : index
    %c0_18 = arith.constant 0 : index
    %22 = vector.load %arg8[%c0_17, %c0_18] : memref<2x128xf32, #tpu.memory_space<vmem>>, vector<2x128xf32>
    tpu.vector_store %arg8[%c0_17, %c0_18], %21 {strides = array<i32>} : memref<2x128xf32, #tpu.memory_space<vmem>>, vector<2x128xf32>,
    return
  }
  func.func @transform_0(%arg0: i32) -> (i32, i32) {
    %c0_i32 = arith.constant 0 : i32
    %c0_i32_0 = arith.constant 0 : i32
    return %arg0, %c0_i32 : i32, i32
  }
  func.func @transform_1(%arg0: i32) -> (i32, i32) {
    %c0_i32 = arith.constant 0 : i32
    %c0_i32_0 = arith.constant 0 : i32
    %c0_i32_1 = arith.constant 0 : i32
    return %c0_i32, %c0_i32_0 : i32, i32
  }
  func.func @transform_2(%arg0: i32) -> (i32, i32) {
    %c0_i32 = arith.constant 0 : i32
    %c0_i32_0 = arith.constant 0 : i32
    %c0_i32_1 = arith.constant 0 : i32
    return %c0_i32, %c0_i32_0 : i32, i32
  }
  func.func @transform_3(%arg0: i32) -> (i32, i32) {
    %c0_i32 = arith.constant 0 : i32
    %c0_i32_0 = arith.constant 0 : i32
    %c0_i32_1 = arith.constant 0 : i32
    return %c0_i32, %c0_i32_0 : i32, i32
  }
  func.func @transform_4(%arg0: i32) -> (i32, i32) {
    %c0_i32 = arith.constant 0 : i32
    %c0_i32_0 = arith.constant 0 : i32
    %c0_i32_1 = arith.constant 0 : i32
    return %c0_i32, %c0_i32_0 : i32, i32
  }
  func.func @transform_5(%arg0: i32) -> (i32, i32) {
    %c0_i32 = arith.constant 0 : i32
    %c0_i32_0 = arith.constant 0 : i32
    %c0_i32_1 = arith.constant 0 : i32
    return %c0_i32, %c0_i32_0 : i32, i32
  }
  func.func @transform_6(%arg0: i32) -> (i32, i32) {
    %c0_i32 = arith.constant 0 : i32
    %c0_i32_0 = arith.constant 0 : i32
    %c0_i32_1 = arith.constant 0 : i32
    return %c0_i32, %c0_i32_0 : i32, i32
  }
  func.func @transform_7(%arg0: i32) -> (i32, i32) {
    %c0_i32 = arith.constant 0 : i32
    %c0_i32_0 = arith.constant 0 : i32
    return %arg0, %c0_i32 : i32, i32
  }
}

</mosaic_0001>

<bundles_post_ra>
// kernel: tpu_custom_call.1
= control target key start
LH: loop header
LB: loop body
LE: loop exit
PB: predicated region body
PF: predicated region fallthrough
CT: control target
= control target key end

     0   :  { %12 = vsyncpa [#allocation3], 0  ;;  %s3911_s0 = inlined_call_operand.hbm [shape: bf16[2,1024], index: 0, kind: input, shape index: {}]   ;;  %s3912_s1 = inlined_call_operand.hbm [shape: bf16[1024,512], index: 1, kind: input, shape index: {}]   ;;  %s3913_s2 = inlined_call_operand.vmem [shape: f32[1,512], index: 2, kind: input, shape index: {}]   ;;  %s3914_s3 = inlined_call_operand.hbm [shape: bf16[512,256], index: 3, kind: input, shape index: {}]   ;;  %s3915_s4 = inlined_call_operand.vmem [shape: f32[1,256], index: 4, kind: input, shape index: {}]   ;;  %s3916_s5 = inlined_call_operand.hbm [shape: bf16[256,128], index: 5, kind: input, shape index: {}]   ;;  %s3917_s6 = inlined_call_operand.vmem [shape: f32[1,128], index: 6, kind: input, shape index: {}]   ;;  %s3918_s7 = inlined_call_operand.hbm [shape: f32[2,128], index: 7, kind: output, shape index: {}]  }
   0x1   :  { %13 = vsyncpa [#allocation6], 0 }
   0x2   :  { %14 = vsyncpa [#allocation9], 0 }
   0x3   :  { %15 = vsyncpa [#allocation4], 0  ;;  %s3727_s24 = smov [#allocation5]   ;;  %s3609_s28 = scalar_lea.hbm %s3912_s1, 32768 }
   0x4   :  { %s31_s25 = sshll.u32 %s3727_s24, 4  ;;  %p3610_p0 = scmp.ne.s32.totalorder %s3912_s1, %s3609_s28  ;;  %s32_s25 = int_to_ptr.vmem [resolvable:$true] %s31_s25 }
   0x5   :  { %p3613_p1 = scmp.lt.u32.totalorder %s3609_s28, %s3912_s1 }
   0x7   :  { %p3615_p2 = pnand %p3613_p1, %p3610_p0 }
   0x9   :  { %3618 = shalt.err (!%p3615_p2)
}
   0xa   :  { %s3619_s10 = scalar_lea.vmem %s32_s25, 32768  ;;  %p3624_p4 = scmp.lt.s32.totalorder %s32_s25, %s32_s25 }
   0xb   :  { %p3620_p3 = scmp.ne.s32.totalorder %s32_s25, %s3619_s10  ;;  %p3625_p5 = scmp.lt.s32.totalorder %s3619_s10, %s3619_s10 }
   0xd   :  { %p3626_p6 = por %p3625_p5, %p3624_p4 }
   0xf   :  { %p3627_p7 = pnand %p3626_p6, %p3620_p3 }
  0x11   :  { %3630 = shalt.err (!%p3627_p7)
}
  0x12   :  { %s3728_s11 = smov 256   ;;  %s3729_s12 = smov 16  }
  0x13   :  { %37 = dma.hbm_to_vmem [thread:$0]  %s3912_s1, 32768, %s32_s25, [#allocation6], %s3728_s11, %s3728_s11, %s3729_s12  }
  0x14   :  { %s3730_s15 = smov [#allocation2]   ;;  %s3731_s17 = smov [#allocation7]  }
  0x15   :  { %s22_s16 = sshll.u32 %s3730_s15, 4  ;;  %s45_s18 = sshll.u32 %s3731_s17, 4  ;;  %s23_s16 = int_to_ptr.vmem [resolvable:$true] %s22_s16  ;;  %s46_s18 = int_to_ptr.vmem [resolvable:$true] %s45_s18 }
  0x16   :  { %s3631_s21 = scalar_lea.hbm %s3911_s0, 128 }
  0x17   :  { %p3632_p8 = scmp.ne.s32.totalorder %s3911_s0, %s3631_s21  ;;  %p3635_p9 = scmp.lt.u32.totalorder %s3631_s21, %s3911_s0 }
  0x19   :  { %p3637_p10 = pnand %p3635_p9, %p3632_p8 }
  0x1b   :  { %3640 = shalt.err (!%p3637_p10)
}
  0x1c   :  { %s3641_s1 = scalar_lea.vmem %s23_s16, 128  ;;  %p3646_p12 = scmp.lt.s32.totalorder %s23_s16, %s23_s16 }
  0x1d   :  { %p3642_p11 = scmp.ne.s32.totalorder %s23_s16, %s3641_s1  ;;  %p3647_p13 = scmp.lt.s32.totalorder %s3641_s1, %s3641_s1 }
  0x1f   :  { %p3648_p0 = por %p3647_p13, %p3646_p12 }
  0x21   :  { %p3649_p1 = pnand %p3648_p0, %p3642_p11 }
  0x23   :  { %3652 = shalt.err (!%p3649_p1)
}
  0x24   :  { %25 = dma.hbm_to_vmem [thread:$0]  %s3911_s0, 128, %s23_s16, [#allocation3]  }
  0x25   :  { %s3653_s30 = scalar_lea.hbm %s3914_s3, 8192 }
  0x26   :  { %p3654_p2 = scmp.ne.s32.totalorder %s3914_s3, %s3653_s30  ;;  %p3657_p3 = scmp.lt.u32.totalorder %s3653_s30, %s3914_s3 }
  0x28   :  { %p3659_p4 = pnand %p3657_p3, %p3654_p2 }
  0x2a   :  { %3662 = shalt.err (!%p3659_p4)
}
  0x2b   :  { %s3663_s12 = scalar_lea.vmem %s46_s18, 8192  ;;  %p3668_p6 = scmp.lt.s32.totalorder %s46_s18, %s46_s18 }
  0x2c   :  { %p3664_p5 = scmp.ne.s32.totalorder %s46_s18, %s3663_s12  ;;  %p3669_p7 = scmp.lt.s32.totalorder %s3663_s12, %s3663_s12 }
  0x2e   :  { %p3670_p8 = por %p3669_p7, %p3668_p6 }
  0x30   :  { %p3671_p9 = pnand %p3670_p8, %p3664_p5 }
  0x32   :  { %3674 = shalt.err (!%p3671_p9)
}
  0x33   :  { %s3732_s0 = smov 128   ;;  %s3733_s13 = smov 8  }
  0x34   :  { %51 = dma.hbm_to_vmem [thread:$0]  %s3914_s3, 8192, %s46_s18, [#allocation6], %s3732_s0, %s3732_s0, %s3733_s13  }
  0x35   :  { %s3734_s16 = smov [#allocation8]   ;;  %s3675_s21 = scalar_lea.hbm %s3916_s5, 2048 }
  0x36   :  { %s59_s17 = sshll.u32 %s3734_s16, 4  ;;  %p3676_p10 = scmp.ne.s32.totalorder %s3916_s5, %s3675_s21  ;;  %s60_s17 = int_to_ptr.vmem [resolvable:$true] %s59_s17 }
  0x37   :  { %p3679_p11 = scmp.lt.u32.totalorder %s3675_s21, %s3916_s5 }
  0x39   :  { %p3681_p12 = pnand %p3679_p11, %p3676_p10 }
  0x3b   :  { %3684 = shalt.err (!%p3681_p12)
}
  0x3c   :  { %s3685_s1 = scalar_lea.vmem %s60_s17, 2048  ;;  %p3690_p0 = scmp.lt.s32.totalorder %s60_s17, %s60_s17 }
  0x3d   :  { %p3686_p13 = scmp.ne.s32.totalorder %s60_s17, %s3685_s1  ;;  %p3691_p1 = scmp.lt.s32.totalorder %s3685_s1, %s3685_s1 }
  0x3f   :  { %p3692_p2 = por %p3691_p1, %p3690_p0 }
  0x41   :  { %p3693_p3 = pnand %p3692_p2, %p3686_p13 }
  0x43   :  { %3696 = shalt.err (!%p3693_p3)
}
  0x44   :  { %s3735_s3 = smov 64   ;;  %s3736_s18 = smov 4  }
  0x45   :  { %65 = dma.hbm_to_vmem [thread:$0]  %s3916_s5, 2048, %s60_s17, [#allocation9], %s3735_s3, %s3735_s3, %s3736_s18  }
  0x46   :  { %3719 = dma.done.wait [#allocation3], 128  }
  0x47   :  { %3720 = vsyncadd [#allocation3], 4294967168 }
  0x48   :  { %3721 = dma.done.wait [#allocation6], 40960  }
  0x49   :  { %3722 = vsyncadd [#allocation6], 4294926336 }
  0x4a   :  { %3723 = dma.done.wait [#allocation9], 2048  }
  0x4b   :  { %3724 = vsyncadd [#allocation9], 4294965248  ;;  %v3112_v0 = vld [vmem:[#allocation5 + $0x4] ss:$16 sps:$4 sm:$0xff]   ;;  %v3116_v2 = vld [vmem:[#allocation5] ss:$16 sps:$4 sm:$0xff]   ;;  %v340_v36 = vlaneseq }
  0x4c   :  { %v3114_v1 = vld [vmem:[#allocation5 + $0x204] ss:$16 sps:$4 sm:$0xff]   ;;  %1698 = vmatprep.subr.bf16.mxu1 %v3112_v0  ;;  %v3117_v3 = vld [vmem:[#allocation5 + $0x200] ss:$16 sps:$4 sm:$0xff]   ;;  %v3737_v37 = vmov 1966171168  }
  0x4d   :  { %1739 = vmatprep.subr.bf16.mxu0 %v3114_v1  ;;  %v3118_v4 = vld [vmem:[#allocation5 + $0x24] ss:$16 sps:$4 sm:$0xff]   ;;  %1699 = vmatpush1.bf16.msra.mxu1 %v3116_v2  ;;  %v3122_v6 = vld [vmem:[#allocation5 + $0x20] ss:$16 sps:$4 sm:$0xff]   ;;  %v363_v38 = vunpack.c.l.s4 %v3737_v37  ;;  %v3827_v42 = vshrl.u32 %v340_v36, 7  ;;  %v81_v52 = vld [vmem:[#allocation2] sm:$0xff] }
  0x4e   :  { %1740 = vmatpush1.bf16.msra.mxu0 %v3117_v3  ;;  %v3120_v5 = vld [vmem:[#allocation5 + $0x224] ss:$16 sps:$4 sm:$0xff]   ;;  %1700 = vmatprep.subr.bf16.mxu1 %v3118_v4  ;;  %v3123_v7 = vld [vmem:[#allocation5 + $0x220] ss:$16 sps:$4 sm:$0xff]   ;;  %v361_v55 = vcombine.high %v81_v52, %v81_v52  ;;  %v3235_v37 = vld [vmem:[#allocation5 + $0x88] ss:$16 sps:$4 sm:$0xff]  }
  0x4f   :  { %1741 = vmatprep.subr.bf16.mxu0 %v3120_v5  ;;  %v3124_v8 = vld [vmem:[#allocation5 + $0x44] ss:$16 sps:$4 sm:$0xff]   ;;  %v3128_v10 = vld [vmem:[#allocation5 + $0x40] ss:$16 sps:$4 sm:$0xff]   ;;  %v364_v43 = vunpack.c.0.s8 %v363_v38  ;;  %s3738_s8 = smov [#allocation10]  }
  0x50   :  { %v3126_v9 = vld [vmem:[#allocation5 + $0x244] ss:$16 sps:$4 sm:$0xff]   ;;  %v3129_v11 = vld [vmem:[#allocation5 + $0x240] ss:$16 sps:$4 sm:$0xff]   ;;  %s2698_s9 = sshll.u32 %s3738_s8, 4  ;;  %s2699_s9 = int_to_ptr.vmem [resolvable:$true] %s2698_s9 }
  0x51   :  { %1701 = vmatpush1.bf16.msra.mxu1 %v3122_v6  ;;  %v3130_v12 = vld [vmem:[#allocation5 + $0x64] ss:$16 sps:$4 sm:$0xff]   ;;  %v3134_v14 = vld [vmem:[#allocation5 + $0x60] ss:$16 sps:$4 sm:$0xff]   ;;  %v3830_v49 = vsub.s32 %v364_v43, %v3827_v42  ;;  %s3697_s10 = scalar_lea.vmem %s2699_s9, 32  ;;  %p3702_p5 = scmp.lt.s32.totalorder %s2699_s9, %s2699_s9 }
  0x52   :  { %1742 = vmatpush1.bf16.msra.mxu0 %v3123_v7  ;;  %1702 = vmatprep.subr.bf16.mxu1 %v3124_v8  ;;  %v3132_v13 = vld [vmem:[#allocation5 + $0x264] ss:$16 sps:$4 sm:$0xff]   ;;  %v3135_v15 = vld [vmem:[#allocation5 + $0x260] ss:$16 sps:$4 sm:$0xff]   ;;  %p3698_p4 = scmp.ne.s32.totalorder %s2699_s9, %s3697_s10  ;;  %p3703_p6 = scmp.lt.s32.totalorder %s3697_s10, %s3697_s10 }
  0x53   :  { %1743 = vmatprep.subr.bf16.mxu0 %v3126_v9  ;;  %v3136_v16 = vld [vmem:[#allocation5 + $0x84] ss:$16 sps:$4 sm:$0xff]   ;;  %v3140_v18 = vld [vmem:[#allocation5 + $0x80] ss:$16 sps:$4 sm:$0xff]   ;;  %v368_v54 = vrot.slane %v81_v52, %v3830_v49  ;;  %v375_v60 = vrot.slane %v361_v55, %v3830_v49  ;;  %v3261_v52 = vld [vmem:[#allocation5 + $0x10c] ss:$16 sps:$4 sm:$0xff]  }
  0x54   :  { %v3138_v17 = vld [vmem:[#allocation5 + $0x284] ss:$16 sps:$4 sm:$0xff]   ;;  %v3141_v19 = vld [vmem:[#allocation5 + $0x280] ss:$16 sps:$4 sm:$0xff]   ;;  %p3704_p7 = por %p3703_p6, %p3702_p5 }
  0x55   :  { %1703 = vmatpush1.bf16.msra.mxu1 %v3128_v10  ;;  %v3142_v20 = vld [vmem:[#allocation5 + $0xa4] ss:$16 sps:$4 sm:$0xff]   ;;  %v3146_v22 = vld [vmem:[#allocation5 + $0xa0] ss:$16 sps:$4 sm:$0xff]   ;;  %v376_v59 = vcombine.high %v368_v54, %v368_v54  ;;  %v3836_v63 = vrot.slane %v375_v60, %v3830_v49 }
  0x56   :  { %1744 = vmatpush1.bf16.msra.mxu0 %v3129_v11  ;;  %1704 = vmatprep.subr.bf16.mxu1 %v3130_v12  ;;  %v3144_v21 = vld [vmem:[#allocation5 + $0x2a4] ss:$16 sps:$4 sm:$0xff]   ;;  %v3147_v23 = vld [vmem:[#allocation5 + $0x2a0] ss:$16 sps:$4 sm:$0xff]   ;;  %p3705_p8 = pnand %p3704_p7, %p3698_p4 }
  0x57   :  { %1745 = vmatprep.subr.bf16.mxu0 %v3132_v13  ;;  %v3148_v24 = vld [vmem:[#allocation5 + $0xc4] ss:$16 sps:$4 sm:$0xff]   ;;  %v3152_v26 = vld [vmem:[#allocation5 + $0xc0] ss:$16 sps:$4 sm:$0xff]   ;;  %v398_v62 = vrot.slane %v376_v59, %v3830_v49  ;;  %v3842_v13 = vrot.slane %v368_v54, %v3830_v49  ;;  %v3259_v54 = vld [vmem:[#allocation5 + $0x108] ss:$16 sps:$4 sm:$0xff]  }
  0x58   :  { %v3150_v25 = vld [vmem:[#allocation5 + $0x2c4] ss:$16 sps:$4 sm:$0xff]   ;;  %v3153_v27 = vld [vmem:[#allocation5 + $0x2c0] ss:$16 sps:$4 sm:$0xff]  }
  0x59   :  { %1705 = vmatpush1.bf16.msra.mxu1 %v3134_v14  ;;  %v3154_v28 = vld [vmem:[#allocation5 + $0xe4] ss:$16 sps:$4 sm:$0xff]   ;;  %v3158_v30 = vld [vmem:[#allocation5 + $0xe0] ss:$16 sps:$4 sm:$0xff]   ;;  %v3838_v3 = vcombine.high %v398_v62, %v398_v62  ;;  %1730 = vmatprep.mubr.bf16.mxu1 %v398_v62 }
  0x5a   :  { %1746 = vmatpush1.bf16.msra.mxu0 %v3135_v15  ;;  %1706 = vmatprep.subr.bf16.mxu1 %v3136_v16  ;;  %v3156_v29 = vld [vmem:[#allocation5 + $0x2e4] ss:$16 sps:$4 sm:$0xff]   ;;  %v3159_v31 = vld [vmem:[#allocation5 + $0x2e0] ss:$16 sps:$4 sm:$0xff]   ;;  %v3213_v16 = vld [vmem:[#allocation5 + $0xc] ss:$16 sps:$4 sm:$0xff]  }
  0x5b   :  { %1747 = vmatprep.subr.bf16.mxu0 %v3138_v17  ;;  %v3160_v32 = vld [vmem:[#allocation5 + $0x104] ss:$16 sps:$4 sm:$0xff]   ;;  %v3164_v34 = vld [vmem:[#allocation5 + $0x100] ss:$16 sps:$4 sm:$0xff]   ;;  %1771 = vmatprep.mubr.bf16.mxu0 %v3838_v3  ;;  %v377_v17 = vcombine.high %v375_v60, %v375_v60  ;;  %v3273_v60 = vld [vmem:[#allocation5 + $0x14c] ss:$16 sps:$4 sm:$0xff]  }
  0x5c   :  { %v3162_v33 = vld [vmem:[#allocation5 + $0x304] ss:$16 sps:$4 sm:$0xff]   ;;  %v3165_v35 = vld [vmem:[#allocation5 + $0x300] ss:$16 sps:$4 sm:$0xff]  }
  0x5d   :  { %1707 = vmatpush1.bf16.msra.mxu1 %v3140_v18  ;;  %v3166_v39 = vld [vmem:[#allocation5 + $0x124] ss:$16 sps:$4 sm:$0xff]   ;;  %v3170_v41 = vld [vmem:[#allocation5 + $0x120] ss:$16 sps:$4 sm:$0xff]  }
  0x5e   :  { %1748 = vmatpush1.bf16.msra.mxu0 %v3141_v19  ;;  %1708 = vmatprep.subr.bf16.mxu1 %v3142_v20  ;;  %v3168_v40 = vld [vmem:[#allocation5 + $0x324] ss:$16 sps:$4 sm:$0xff]   ;;  %v3171_v44 = vld [vmem:[#allocation5 + $0x320] ss:$16 sps:$4 sm:$0xff]   ;;  %v3846_v19 = vcombine.high %v3842_v13, %v3842_v13  ;;  %v3211_v20 = vld [vmem:[#allocation5 + $0x8] ss:$16 sps:$4 sm:$0xff]  }
  0x5f   :  { %1749 = vmatprep.subr.bf16.mxu0 %v3144_v21  ;;  %v3172_v45 = vld [vmem:[#allocation5 + $0x144] ss:$16 sps:$4 sm:$0xff]   ;;  %v3176_v47 = vld [vmem:[#allocation5 + $0x140] ss:$16 sps:$4 sm:$0xff]  }
  0x60   :  { %v3174_v46 = vld [vmem:[#allocation5 + $0x344] ss:$16 sps:$4 sm:$0xff]   ;;  %v3177_v48 = vld [vmem:[#allocation5 + $0x340] ss:$16 sps:$4 sm:$0xff]  }
  0x61   :  { %1709 = vmatpush1.bf16.msra.mxu1 %v3146_v22  ;;  %v3178_v50 = vld [vmem:[#allocation5 + $0x164] ss:$16 sps:$4 sm:$0xff]   ;;  %v3182_v53 = vld [vmem:[#allocation5 + $0x160] ss:$16 sps:$4 sm:$0xff]   ;;  %v3219_v22 = vld [vmem:[#allocation5 + $0x2c] ss:$16 sps:$4 sm:$0xff]  }
  0x62   :  { %1750 = vmatpush1.bf16.msra.mxu0 %v3147_v23  ;;  %1710 = vmatprep.subr.bf16.mxu1 %v3148_v24  ;;  %v3180_v51 = vld [vmem:[#allocation5 + $0x364] ss:$16 sps:$4 sm:$0xff]   ;;  %v3183_v56 = vld [vmem:[#allocation5 + $0x360] ss:$16 sps:$4 sm:$0xff]   ;;  %v3849_v23 = vrot.slane %v377_v17, %v3830_v49  ;;  %v3295_v17 = vld [vmem:[#allocation5 + $0x1c8] ss:$16 sps:$4 sm:$0xff]  }
  0x63   :  { %1751 = vmatprep.subr.bf16.mxu0 %v3150_v25  ;;  %v3184_v57 = vld [vmem:[#allocation5 + $0x184] ss:$16 sps:$4 sm:$0xff]   ;;  %v3188_v61 = vld [vmem:[#allocation5 + $0x180] ss:$16 sps:$4 sm:$0xff]   ;;  %v3217_v25 = vld [vmem:[#allocation5 + $0x28] ss:$16 sps:$4 sm:$0xff]  }
  0x64   :  { %v3186_v58 = vld [vmem:[#allocation5 + $0x384] ss:$16 sps:$4 sm:$0xff]   ;;  %v3189_v0 = vld [vmem:[#allocation5 + $0x380] ss:$16 sps:$4 sm:$0xff]  }
  0x65   :  { %1711 = vmatpush1.bf16.msra.mxu1 %v3152_v26  ;;  %v3190_v1 = vld [vmem:[#allocation5 + $0x1a4] ss:$16 sps:$4 sm:$0xff]   ;;  %v3194_v4 = vld [vmem:[#allocation5 + $0x1a0] ss:$16 sps:$4 sm:$0xff]  }
  0x66   :  { %1752 = vmatpush1.bf16.msra.mxu0 %v3153_v27  ;;  %1712 = vmatprep.subr.bf16.mxu1 %v3154_v28  ;;  %v3192_v2 = vld [vmem:[#allocation5 + $0x3a4] ss:$16 sps:$4 sm:$0xff]   ;;  %v3195_v5 = vld [vmem:[#allocation5 + $0x3a0] ss:$16 sps:$4 sm:$0xff]   ;;  %v3225_v27 = vld [vmem:[#allocation5 + $0x4c] ss:$16 sps:$4 sm:$0xff]  }
  0x67   :  { %1753 = vmatprep.subr.bf16.mxu0 %v3156_v29  ;;  %v3196_v6 = vld [vmem:[#allocation5 + $0x1c4] ss:$16 sps:$4 sm:$0xff]   ;;  %v3200_v8 = vld [vmem:[#allocation5 + $0x1c0] ss:$16 sps:$4 sm:$0xff]   ;;  %v3223_v29 = vld [vmem:[#allocation5 + $0x48] ss:$16 sps:$4 sm:$0xff]  }
  0x68   :  { %v3198_v7 = vld [vmem:[#allocation5 + $0x3c4] ss:$16 sps:$4 sm:$0xff]   ;;  %v3201_v9 = vld [vmem:[#allocation5 + $0x3c0] ss:$16 sps:$4 sm:$0xff]  }
  0x69   :  { %1713 = vmatpush1.bf16.msra.mxu1 %v3158_v30  ;;  %v3202_v10 = vld [vmem:[#allocation5 + $0x1e4] ss:$16 sps:$4 sm:$0xff]   ;;  %v3206_v12 = vld [vmem:[#allocation5 + $0x1e0] ss:$16 sps:$4 sm:$0xff]  }
  0x6a   :  { %1754 = vmatpush1.bf16.msra.mxu0 %v3159_v31  ;;  %1714 = vmatprep.subr.bf16.mxu1 %v3160_v32  ;;  %v3204_v11 = vld [vmem:[#allocation5 + $0x3e4] ss:$16 sps:$4 sm:$0xff]   ;;  %v3207_v14 = vld [vmem:[#allocation5 + $0x3e0] ss:$16 sps:$4 sm:$0xff]   ;;  %v3231_v31 = vld [vmem:[#allocation5 + $0x6c] ss:$16 sps:$4 sm:$0xff]  }
  0x6b   :  { %1755 = vmatprep.subr.bf16.mxu0 %v3162_v33  ;;  %v3210_v15 = vld [vmem:[#allocation5 + $0x404] ss:$16 sps:$4 sm:$0xff]   ;;  %v3208_v18 = vld [vmem:[#allocation5 + $0x400] ss:$16 sps:$4 sm:$0xff]   ;;  %v3229_v33 = vld [vmem:[#allocation5 + $0x68] ss:$16 sps:$4 sm:$0xff]  }
  0x6c   :  { %v3216_v21 = vld [vmem:[#allocation5 + $0x424] ss:$16 sps:$4 sm:$0xff]   ;;  %v3214_v24 = vld [vmem:[#allocation5 + $0x420] ss:$16 sps:$4 sm:$0xff]  }
  0x6d   :  { %1715 = vmatpush1.bf16.msra.mxu1 %v3164_v34  ;;  %v3222_v26 = vld [vmem:[#allocation5 + $0x444] ss:$16 sps:$4 sm:$0xff]   ;;  %v3220_v28 = vld [vmem:[#allocation5 + $0x440] ss:$16 sps:$4 sm:$0xff]  }
  0x6e   :  { %1756 = vmatpush1.bf16.msra.mxu0 %v3165_v35  ;;  %1716 = vmatprep.subr.bf16.mxu1 %v3166_v39  ;;  %v3228_v30 = vld [vmem:[#allocation5 + $0x464] ss:$16 sps:$4 sm:$0xff]   ;;  %v3226_v32 = vld [vmem:[#allocation5 + $0x460] ss:$16 sps:$4 sm:$0xff]   ;;  %v3237_v35 = vld [vmem:[#allocation5 + $0x8c] ss:$16 sps:$4 sm:$0xff]  }
  0x6f   :  { %1757 = vmatprep.subr.bf16.mxu0 %v3168_v40  ;;  %v3234_v34 = vld [vmem:[#allocation5 + $0x484] ss:$16 sps:$4 sm:$0xff]   ;;  %v3232_v36 = vld [vmem:[#allocation5 + $0x480] ss:$16 sps:$4 sm:$0xff]   ;;  %v3243_v39 = vld [vmem:[#allocation5 + $0xac] ss:$16 sps:$4 sm:$0xff]  }
  0x70   :  { %v3240_v38 = vld [vmem:[#allocation5 + $0x4a4] ss:$16 sps:$4 sm:$0xff]   ;;  %v3238_v40 = vld [vmem:[#allocation5 + $0x4a0] ss:$16 sps:$4 sm:$0xff]  }
  0x71   :  { %1717 = vmatpush1.bf16.msra.mxu1 %v3170_v41  ;;  %v3241_v41 = vld [vmem:[#allocation5 + $0xa8] ss:$16 sps:$4 sm:$0xff]   ;;  %v3246_v43 = vld [vmem:[#allocation5 + $0x4c4] ss:$16 sps:$4 sm:$0xff]   ;;  %v3250_v49 = vld [vmem:[#allocation5 + $0x4e0] ss:$16 sps:$4 sm:$0xff]  }
  0x72   :  { %1758 = vmatpush1.bf16.msra.mxu0 %v3171_v44  ;;  %1718 = vmatprep.subr.bf16.mxu1 %v3172_v45  ;;  %v3249_v44 = vld [vmem:[#allocation5 + $0xcc] ss:$16 sps:$4 sm:$0xff]   ;;  %v3244_v45 = vld [vmem:[#allocation5 + $0x4c0] ss:$16 sps:$4 sm:$0xff]   ;;  %v3264_v55 = vld [vmem:[#allocation5 + $0x524] ss:$16 sps:$4 sm:$0xff]  }
  0x73   :  { %1759 = vmatprep.subr.bf16.mxu0 %v3174_v46  ;;  %v3247_v46 = vld [vmem:[#allocation5 + $0xc8] ss:$16 sps:$4 sm:$0xff]   ;;  %v3270_v59 = vld [vmem:[#allocation5 + $0x544] ss:$16 sps:$4 sm:$0xff]  }
  0x75   :  { %1719 = vmatpush1.bf16.msra.mxu1 %v3176_v47  ;;  %v3252_v47 = vld [vmem:[#allocation5 + $0x4e4] ss:$16 sps:$4 sm:$0xff]  }
  0x76   :  { %1760 = vmatpush1.bf16.msra.mxu0 %v3177_v48  ;;  %1720 = vmatprep.subr.bf16.mxu1 %v3178_v50  ;;  %v3255_v48 = vld [vmem:[#allocation5 + $0xec] ss:$16 sps:$4 sm:$0xff]   ;;  %v3253_v50 = vld [vmem:[#allocation5 + $0xe8] ss:$16 sps:$4 sm:$0xff]  }
  0x77   :  { %1761 = vmatprep.subr.bf16.mxu0 %v3180_v51  ;;  %v3258_v51 = vld [vmem:[#allocation5 + $0x504] ss:$16 sps:$4 sm:$0xff]  }
  0x79   :  { %1721 = vmatpush1.bf16.msra.mxu1 %v3182_v53  ;;  %v3256_v53 = vld [vmem:[#allocation5 + $0x500] ss:$16 sps:$4 sm:$0xff]  }
  0x7a   :  { %1762 = vmatpush1.bf16.msra.mxu0 %v3183_v56  ;;  %1722 = vmatprep.subr.bf16.mxu1 %v3184_v57  ;;  %v3267_v56 = vld [vmem:[#allocation5 + $0x12c] ss:$16 sps:$4 sm:$0xff]   ;;  %v3262_v57 = vld [vmem:[#allocation5 + $0x520] ss:$16 sps:$4 sm:$0xff]  }
  0x7b   :  { %1763 = vmatprep.subr.bf16.mxu0 %v3186_v58  ;;  %v3265_v58 = vld [vmem:[#allocation5 + $0x128] ss:$16 sps:$4 sm:$0xff]  }
  0x7d   :  { %1723 = vmatpush1.bf16.msra.mxu1 %v3188_v61  ;;  %v3268_v61 = vld [vmem:[#allocation5 + $0x540] ss:$16 sps:$4 sm:$0xff]  }
  0x7e   :  { %1764 = vmatpush1.bf16.msra.mxu0 %v3189_v0  ;;  %1724 = vmatprep.subr.bf16.mxu1 %v3190_v1  ;;  %v3276_v0 = vld [vmem:[#allocation5 + $0x564] ss:$16 sps:$4 sm:$0xff]   ;;  %v3279_v1 = vld [vmem:[#allocation5 + $0x16c] ss:$16 sps:$4 sm:$0xff]  }
  0x7f   :  { %1765 = vmatprep.subr.bf16.mxu0 %v3192_v2  ;;  %v3274_v2 = vld [vmem:[#allocation5 + $0x560] ss:$16 sps:$4 sm:$0xff]  }
  0x81   :  { %1725 = vmatpush1.bf16.msra.mxu1 %v3194_v4  ;;  %v3277_v4 = vld [vmem:[#allocation5 + $0x168] ss:$16 sps:$4 sm:$0xff]  }
  0x82   :  { %1766 = vmatpush1.bf16.msra.mxu0 %v3195_v5  ;;  %1726 = vmatprep.subr.bf16.mxu1 %v3196_v6  ;;  %v3282_v5 = vld [vmem:[#allocation5 + $0x584] ss:$16 sps:$4 sm:$0xff]   ;;  %v3285_v6 = vld [vmem:[#allocation5 + $0x18c] ss:$16 sps:$4 sm:$0xff]  }
  0x83   :  { %1767 = vmatprep.subr.bf16.mxu0 %v3198_v7  ;;  %v3280_v7 = vld [vmem:[#allocation5 + $0x580] ss:$16 sps:$4 sm:$0xff]  }
  0x85   :  { %1727 = vmatpush1.bf16.msra.mxu1 %v3200_v8  ;;  %v3283_v8 = vld [vmem:[#allocation5 + $0x188] ss:$16 sps:$4 sm:$0xff]  }
  0x86   :  { %1768 = vmatpush1.bf16.msra.mxu0 %v3201_v9  ;;  %1728 = vmatprep.subr.bf16.mxu1 %v3202_v10  ;;  %v3288_v9 = vld [vmem:[#allocation5 + $0x5a4] ss:$16 sps:$4 sm:$0xff]   ;;  %v3291_v10 = vld [vmem:[#allocation5 + $0x1ac] ss:$16 sps:$4 sm:$0xff]  }
  0x87   :  { %1769 = vmatprep.subr.bf16.mxu0 %v3204_v11  ;;  %v3286_v11 = vld [vmem:[#allocation5 + $0x5a0] ss:$16 sps:$4 sm:$0xff]  }
  0x89   :  { %1729 = vmatpush1.bf16.msra.mxu1 %v3206_v12  ;;  %v3289_v12 = vld [vmem:[#allocation5 + $0x1a8] ss:$16 sps:$4 sm:$0xff]  }
  0x8a   :  { %1770 = vmatpush1.bf16.msra.mxu0 %v3207_v14  ;;  %1862 = vmatprep.subr.bf16.mxu1 %v3213_v16  ;;  %v3294_v14 = vld [vmem:[#allocation5 + $0x5c4] ss:$16 sps:$4 sm:$0xff]   ;;  %v3292_v16 = vld [vmem:[#allocation5 + $0x5c0] ss:$16 sps:$4 sm:$0xff]  }
  0x8b   :  { %1780 = vmatprep.subr.bf16.mxu0 %v3210_v15  ;;  %v3297_v15 = vld [vmem:[#allocation5 + $0x1cc] ss:$16 sps:$4 sm:$0xff]  }
  0x8c   :  { %1731 = vmatmul.mubr.bf16.vlgmr.msra.gmra.mrb[0].mxu1 %v3842_v13 }
  0x8d   :  { %1772 = vmatmul.mubr.bf16.vlgmr.msra.gmra.mrb[0].mxu0 %v3846_v19  ;;  %1863 = vmatpush1.bf16.msra.mxu1 %v3211_v20  ;;  %v3303_v20 = vld [vmem:[#allocation5 + $0x1ec] ss:$16 sps:$4 sm:$0xff]  }
  0x8e   :  { %1781 = vmatpush1.bf16.msra.mxu0 %v3208_v18  ;;  %1864 = vmatprep.subr.bf16.mxu1 %v3219_v22  ;;  %v3300_v18 = vld [vmem:[#allocation5 + $0x5e4] ss:$16 sps:$4 sm:$0xff]   ;;  %v3301_v22 = vld [vmem:[#allocation5 + $0x1e8] ss:$16 sps:$4 sm:$0xff]  }
  0x8f   :  { %1782 = vmatprep.subr.bf16.mxu0 %v3216_v21  ;;  %1812 = vmatprep.mubr.bf16.mxu0 %v3849_v23  ;;  %v3298_v21 = vld [vmem:[#allocation5 + $0x5e0] ss:$16 sps:$4 sm:$0xff]  }
  0x90   :  { %1894 = vmatprep.mubr.bf16.mxu1 %v398_v62  ;;  %v3271_v62 = vld [vmem:[#allocation5 + $0x148] ss:$16 sps:$4 sm:$0xff]  }
  0x91   :  { %1865 = vmatpush1.bf16.msra.mxu1 %v3217_v25  ;;  %v3310_v25 = vld [vmem:[#allocation5 + $0x20c] ss:$16 sps:$4 sm:$0xff]  }
  0x92   :  { %1783 = vmatpush1.bf16.msra.mxu0 %v3214_v24  ;;  %1866 = vmatprep.subr.bf16.mxu1 %v3225_v27  ;;  %v3307_v24 = vld [vmem:[#allocation5 + $0x604] ss:$16 sps:$4 sm:$0xff]   ;;  %v3308_v27 = vld [vmem:[#allocation5 + $0x208] ss:$16 sps:$4 sm:$0xff]  }
  0x93   :  { %1784 = vmatprep.subr.bf16.mxu0 %v3222_v26  ;;  %v3305_v26 = vld [vmem:[#allocation5 + $0x600] ss:$16 sps:$4 sm:$0xff]  }
  0x95   :  { %1867 = vmatpush1.bf16.msra.mxu1 %v3223_v29  ;;  %v3316_v29 = vld [vmem:[#allocation5 + $0x22c] ss:$16 sps:$4 sm:$0xff]  }
  0x96   :  { %1785 = vmatpush1.bf16.msra.mxu0 %v3220_v28  ;;  %1868 = vmatprep.subr.bf16.mxu1 %v3231_v31  ;;  %v3313_v28 = vld [vmem:[#allocation5 + $0x624] ss:$16 sps:$4 sm:$0xff]   ;;  %v3311_v31 = vld [vmem:[#allocation5 + $0x620] ss:$16 sps:$4 sm:$0xff]  }
  0x97   :  { %1786 = vmatprep.subr.bf16.mxu0 %v3228_v30  ;;  %v3856_v30 = vcombine.high %v3849_v23, %v3849_v23 }
  0x99   :  { %1869 = vmatpush1.bf16.msra.mxu1 %v3229_v33  ;;  %v3319_v33 = vld [vmem:[#allocation5 + $0x644] ss:$16 sps:$4 sm:$0xff]  }
  0x9a   :  { %1787 = vmatpush1.bf16.msra.mxu0 %v3226_v32  ;;  %1870 = vmatprep.subr.bf16.mxu1 %v3237_v35  ;;  %v3314_v32 = vld [vmem:[#allocation5 + $0x228] ss:$16 sps:$4 sm:$0xff]   ;;  %v3317_v35 = vld [vmem:[#allocation5 + $0x640] ss:$16 sps:$4 sm:$0xff]  }
  0x9b   :  { %1788 = vmatprep.subr.bf16.mxu0 %v3234_v34  ;;  %v3322_v34 = vld [vmem:[#allocation5 + $0x24c] ss:$16 sps:$4 sm:$0xff]  }
  0x9d   :  { %1871 = vmatpush1.bf16.msra.mxu1 %v3235_v37  ;;  %v3325_v37 = vld [vmem:[#allocation5 + $0x664] ss:$16 sps:$4 sm:$0xff]  }
  0x9e   :  { %1789 = vmatpush1.bf16.msra.mxu0 %v3232_v36  ;;  %1872 = vmatprep.subr.bf16.mxu1 %v3243_v39  ;;  %v3320_v36 = vld [vmem:[#allocation5 + $0x248] ss:$16 sps:$4 sm:$0xff]  }
  0x9f   :  { %1790 = vmatprep.subr.bf16.mxu0 %v3240_v38  ;;  %v3323_v38 = vld [vmem:[#allocation5 + $0x660] ss:$16 sps:$4 sm:$0xff]   ;;  %v3326_v39 = vld [vmem:[#allocation5 + $0x268] ss:$16 sps:$4 sm:$0xff]  }
  0xa1   :  { %1873 = vmatpush1.bf16.msra.mxu1 %v3241_v41  ;;  %v3334_v41 = vld [vmem:[#allocation5 + $0x28c] ss:$16 sps:$4 sm:$0xff]  }
  0xa2   :  { %1791 = vmatpush1.bf16.msra.mxu0 %v3238_v40  ;;  %1874 = vmatprep.subr.bf16.mxu1 %v3249_v44  ;;  %v3331_v40 = vld [vmem:[#allocation5 + $0x684] ss:$16 sps:$4 sm:$0xff]  }
  0xa3   :  { %1792 = vmatprep.subr.bf16.mxu0 %v3246_v43  ;;  %v3329_v43 = vld [vmem:[#allocation5 + $0x680] ss:$16 sps:$4 sm:$0xff]   ;;  %v3337_v44 = vld [vmem:[#allocation5 + $0x6a4] ss:$16 sps:$4 sm:$0xff]  }
  0xa5   :  { %1875 = vmatpush1.bf16.msra.mxu1 %v3247_v46  ;;  %v3335_v46 = vld [vmem:[#allocation5 + $0x6a0] ss:$16 sps:$4 sm:$0xff]  }
  0xa6   :  { %1793 = vmatpush1.bf16.msra.mxu0 %v3244_v45  ;;  %1876 = vmatprep.subr.bf16.mxu1 %v3255_v48  ;;  %v3340_v45 = vld [vmem:[#allocation5 + $0x2ac] ss:$16 sps:$4 sm:$0xff]   ;;  %v3343_v48 = vld [vmem:[#allocation5 + $0x6c4] ss:$16 sps:$4 sm:$0xff]  }
  0xa7   :  { %1794 = vmatprep.subr.bf16.mxu0 %v3252_v47  ;;  %v3338_v47 = vld [vmem:[#allocation5 + $0x2a8] ss:$16 sps:$4 sm:$0xff]  }
  0xa9   :  { %1877 = vmatpush1.bf16.msra.mxu1 %v3253_v50  ;;  %v3341_v50 = vld [vmem:[#allocation5 + $0x6c0] ss:$16 sps:$4 sm:$0xff]  }
  0xaa   :  { %1795 = vmatpush1.bf16.msra.mxu0 %v3250_v49  ;;  %1878 = vmatprep.subr.bf16.mxu1 %v3261_v52  ;;  %v3346_v49 = vld [vmem:[#allocation5 + $0x2cc] ss:$16 sps:$4 sm:$0xff]   ;;  %v3349_v52 = vld [vmem:[#allocation5 + $0x6e4] ss:$16 sps:$4 sm:$0xff]  }
  0xab   :  { %1796 = vmatprep.subr.bf16.mxu0 %v3258_v51  ;;  %v3344_v51 = vld [vmem:[#allocation5 + $0x2c8] ss:$16 sps:$4 sm:$0xff]  }
  0xad   :  { %1879 = vmatpush1.bf16.msra.mxu1 %v3259_v54  ;;  %v3347_v54 = vld [vmem:[#allocation5 + $0x6e0] ss:$16 sps:$4 sm:$0xff]  }
  0xae   :  { %1797 = vmatpush1.bf16.msra.mxu0 %v3256_v53  ;;  %1880 = vmatprep.subr.bf16.mxu1 %v3267_v56  ;;  %v3352_v53 = vld [vmem:[#allocation5 + $0x2ec] ss:$16 sps:$4 sm:$0xff]   ;;  %v3355_v56 = vld [vmem:[#allocation5 + $0x704] ss:$16 sps:$4 sm:$0xff]  }
  0xaf   :  { %1798 = vmatprep.subr.bf16.mxu0 %v3264_v55  ;;  %v3350_v55 = vld [vmem:[#allocation5 + $0x2e8] ss:$16 sps:$4 sm:$0xff]  }
  0xb1   :  { %1881 = vmatpush1.bf16.msra.mxu1 %v3265_v58  ;;  %v3353_v58 = vld [vmem:[#allocation5 + $0x700] ss:$16 sps:$4 sm:$0xff]  }
  0xb2   :  { %1799 = vmatpush1.bf16.msra.mxu0 %v3262_v57  ;;  %1882 = vmatprep.subr.bf16.mxu1 %v3273_v60  ;;  %v3358_v57 = vld [vmem:[#allocation5 + $0x30c] ss:$16 sps:$4 sm:$0xff]   ;;  %v3361_v60 = vld [vmem:[#allocation5 + $0x724] ss:$16 sps:$4 sm:$0xff]  }
  0xb3   :  { %1800 = vmatprep.subr.bf16.mxu0 %v3270_v59  ;;  %v3356_v59 = vld [vmem:[#allocation5 + $0x308] ss:$16 sps:$4 sm:$0xff]  }
  0xb5   :  { %1883 = vmatpush1.bf16.msra.mxu1 %v3271_v62  ;;  %v3359_v62 = vld [vmem:[#allocation5 + $0x720] ss:$16 sps:$4 sm:$0xff]  }
  0xb6   :  { %1801 = vmatpush1.bf16.msra.mxu0 %v3268_v61  ;;  %1884 = vmatprep.subr.bf16.mxu1 %v3279_v1  ;;  %v3364_v61 = vld [vmem:[#allocation5 + $0x32c] ss:$16 sps:$4 sm:$0xff]   ;;  %v3367_v1 = vld [vmem:[#allocation5 + $0x744] ss:$16 sps:$4 sm:$0xff]  }
  0xb7   :  { %1802 = vmatprep.subr.bf16.mxu0 %v3276_v0  ;;  %v3362_v0 = vld [vmem:[#allocation5 + $0x328] ss:$16 sps:$4 sm:$0xff]  }
  0xb9   :  { %1885 = vmatpush1.bf16.msra.mxu1 %v3277_v4  ;;  %v3365_v4 = vld [vmem:[#allocation5 + $0x740] ss:$16 sps:$4 sm:$0xff]  }
  0xba   :  { %1803 = vmatpush1.bf16.msra.mxu0 %v3274_v2  ;;  %1886 = vmatprep.subr.bf16.mxu1 %v3285_v6  ;;  %v3370_v2 = vld [vmem:[#allocation5 + $0x34c] ss:$16 sps:$4 sm:$0xff]   ;;  %v3373_v6 = vld [vmem:[#allocation5 + $0x764] ss:$16 sps:$4 sm:$0xff]  }
  0xbb   :  { %1804 = vmatprep.subr.bf16.mxu0 %v3282_v5  ;;  %v3368_v5 = vld [vmem:[#allocation5 + $0x348] ss:$16 sps:$4 sm:$0xff]  }
  0xbd   :  { %1887 = vmatpush1.bf16.msra.mxu1 %v3283_v8  ;;  %v3371_v8 = vld [vmem:[#allocation5 + $0x760] ss:$16 sps:$4 sm:$0xff]  }
  0xbe   :  { %1805 = vmatpush1.bf16.msra.mxu0 %v3280_v7  ;;  %1888 = vmatprep.subr.bf16.mxu1 %v3291_v10  ;;  %v3376_v7 = vld [vmem:[#allocation5 + $0x36c] ss:$16 sps:$4 sm:$0xff]   ;;  %v3379_v10 = vld [vmem:[#allocation5 + $0x784] ss:$16 sps:$4 sm:$0xff]  }
  0xbf   :  { %1806 = vmatprep.subr.bf16.mxu0 %v3288_v9  ;;  %v3374_v9 = vld [vmem:[#allocation5 + $0x368] ss:$16 sps:$4 sm:$0xff]  }
  0xc1   :  { %1889 = vmatpush1.bf16.msra.mxu1 %v3289_v12  ;;  %v3377_v12 = vld [vmem:[#allocation5 + $0x780] ss:$16 sps:$4 sm:$0xff]  }
  0xc2   :  { %1807 = vmatpush1.bf16.msra.mxu0 %v3286_v11  ;;  %1890 = vmatprep.subr.bf16.mxu1 %v3297_v15  ;;  %v3382_v11 = vld [vmem:[#allocation5 + $0x38c] ss:$16 sps:$4 sm:$0xff]   ;;  %v3385_v15 = vld [vmem:[#allocation5 + $0x7a4] ss:$16 sps:$4 sm:$0xff]  }
  0xc3   :  { %1808 = vmatprep.subr.bf16.mxu0 %v3294_v14  ;;  %v3380_v14 = vld [vmem:[#allocation5 + $0x388] ss:$16 sps:$4 sm:$0xff]  }
  0xc5   :  { %1891 = vmatpush1.bf16.msra.mxu1 %v3295_v17  ;;  %v3383_v17 = vld [vmem:[#allocation5 + $0x7a0] ss:$16 sps:$4 sm:$0xff]  }
  0xc6   :  { %1809 = vmatpush1.bf16.msra.mxu0 %v3292_v16  ;;  %1892 = vmatprep.subr.bf16.mxu1 %v3303_v20  ;;  %v3388_v16 = vld [vmem:[#allocation5 + $0x3ac] ss:$16 sps:$4 sm:$0xff]   ;;  %v3391_v20 = vld [vmem:[#allocation5 + $0x7c4] ss:$16 sps:$4 sm:$0xff]  }
  0xc7   :  { %1810 = vmatprep.subr.bf16.mxu0 %v3300_v18  ;;  %v3386_v18 = vld [vmem:[#allocation5 + $0x3a8] ss:$16 sps:$4 sm:$0xff]  }
  0xc9   :  { %1893 = vmatpush1.bf16.msra.mxu1 %v3301_v22  ;;  %v3389_v22 = vld [vmem:[#allocation5 + $0x7c0] ss:$16 sps:$4 sm:$0xff]  }
  0xca   :  { %1811 = vmatpush1.bf16.msra.mxu0 %v3298_v21  ;;  %1903 = vmatprep.subr.bf16.mxu1 %v3310_v25  ;;  %v3394_v21 = vld [vmem:[#allocation5 + $0x3cc] ss:$16 sps:$4 sm:$0xff]   ;;  %v3397_v25 = vld [vmem:[#allocation5 + $0x7e4] ss:$16 sps:$4 sm:$0xff]  }
  0xcb   :  { %1821 = vmatprep.subr.bf16.mxu0 %v3307_v24  ;;  %v3392_v24 = vld [vmem:[#allocation5 + $0x3c8] ss:$16 sps:$4 sm:$0xff]  }
  0xcc   :  { %1895 = vmatmul.mubr.bf16.vlgmr.msra.gmra.mrb[4].mxu1 %v3842_v13  ;;  %v3328_v13 = vld [vmem:[#allocation5 + $0x26c] ss:$16 sps:$4 sm:$0xff]  }
  0xcd   :  { %1813 = vmatmul.mubr.bf16.vlgmr.msra.gmra.mrb[0].mxu0 %v3836_v63  ;;  %1904 = vmatpush1.bf16.msra.mxu1 %v3308_v27  ;;  %v3395_v27 = vld [vmem:[#allocation5 + $0x7e0] ss:$16 sps:$4 sm:$0xff]  }
  0xce   :  { %1822 = vmatpush1.bf16.msra.mxu0 %v3305_v26  ;;  %1905 = vmatprep.subr.bf16.mxu1 %v3316_v29  ;;  %v3400_v26 = vld [vmem:[#allocation5 + $0x3ec] ss:$16 sps:$4 sm:$0xff]  }
  0xcf   :  { %1823 = vmatprep.subr.bf16.mxu0 %v3313_v28  ;;  %1853 = vmatprep.mubr.bf16.mxu0 %v3856_v30  ;;  %v3398_v28 = vld [vmem:[#allocation5 + $0x3e8] ss:$16 sps:$4 sm:$0xff]   ;;  %v3403_v29 = vld [vmem:[#allocation5 + $0x40c] ss:$16 sps:$4 sm:$0xff]  }
  0xd0   :  { %1935 = vmatprep.mubr.bf16.mxu1 %v3838_v3  ;;  %v3332_v3 = vld [vmem:[#allocation5 + $0x288] ss:$16 sps:$4 sm:$0xff]  }
  0xd1   :  { %1906 = vmatpush1.bf16.msra.mxu1 %v3314_v32  ;;  %v3864_v32 = vcombine.high %v3836_v63, %v3836_v63 }
  0xd2   :  { %1824 = vmatpush1.bf16.msra.mxu0 %v3311_v31  ;;  %1907 = vmatprep.subr.bf16.mxu1 %v3322_v34  ;;  %v3401_v31 = vld [vmem:[#allocation5 + $0x408] ss:$16 sps:$4 sm:$0xff]  }
  0xd3   :  { %1825 = vmatprep.subr.bf16.mxu0 %v3319_v33  ;;  %v3406_v33 = vld [vmem:[#allocation5 + $0x42c] ss:$16 sps:$4 sm:$0xff]   ;;  %v3497_v34 = vld [vmem:[#allocation7] ss:$8 sps:$4 sm:$0xff]  }
  0xd5   :  { %1908 = vmatpush1.bf16.msra.mxu1 %v3320_v36  ;;  %v3404_v36 = vld [vmem:[#allocation5 + $0x428] ss:$16 sps:$4 sm:$0xff]  }
  0xd6   :  { %1826 = vmatpush1.bf16.msra.mxu0 %v3317_v35  ;;  %1909 = vmatprep.subr.bf16.mxu1 %v3328_v13  ;;  %v3499_v35 = vld [vmem:[#allocation7 + $0x4] ss:$8 sps:$4 sm:$0xff]  }
  0xd7   :  { %1827 = vmatprep.subr.bf16.mxu0 %v3325_v37  ;;  %v3502_v37 = vld [vmem:[#allocation7 + $0x14] ss:$8 sps:$4 sm:$0xff]  }
  0xd8   :  { %v3409_v13 = vld [vmem:[#allocation5 + $0x44c] ss:$16 sps:$4 sm:$0xff]  }
  0xd9   :  { %1910 = vmatpush1.bf16.msra.mxu1 %v3326_v39  ;;  %v3505_v39 = vld [vmem:[#allocation7 + $0x24] ss:$8 sps:$4 sm:$0xff]  }
  0xda   :  { %1828 = vmatpush1.bf16.msra.mxu0 %v3323_v38  ;;  %1911 = vmatprep.subr.bf16.mxu1 %v3334_v41  ;;  %v3500_v38 = vld [vmem:[#allocation7 + $0x10] ss:$8 sps:$4 sm:$0xff]   ;;  %v3412_v41 = vld [vmem:[#allocation5 + $0x46c] ss:$16 sps:$4 sm:$0xff]  }
  0xdb   :  { %1829 = vmatprep.subr.bf16.mxu0 %v3331_v40  ;;  %v3407_v40 = vld [vmem:[#allocation5 + $0x448] ss:$16 sps:$4 sm:$0xff]  }
  0xdd   :  { %1912 = vmatpush1.bf16.msra.mxu1 %v3332_v3  ;;  %v3415_v3 = vld [vmem:[#allocation5 + $0x48c] ss:$16 sps:$4 sm:$0xff]  }
  0xde   :  { %1830 = vmatpush1.bf16.msra.mxu0 %v3329_v43  ;;  %1913 = vmatprep.subr.bf16.mxu1 %v3340_v45  ;;  %v3410_v43 = vld [vmem:[#allocation5 + $0x468] ss:$16 sps:$4 sm:$0xff]   ;;  %v3511_v45 = vld [vmem:[#allocation7 + $0x44] ss:$8 sps:$4 sm:$0xff]  }
  0xdf   :  { %1831 = vmatprep.subr.bf16.mxu0 %v3337_v44  ;;  %v3508_v44 = vld [vmem:[#allocation7 + $0x34] ss:$8 sps:$4 sm:$0xff]  }
  0xe1   :  { %1914 = vmatpush1.bf16.msra.mxu1 %v3338_v47  ;;  %v3418_v47 = vld [vmem:[#allocation5 + $0x4ac] ss:$16 sps:$4 sm:$0xff]  }
  0xe2   :  { %1832 = vmatpush1.bf16.msra.mxu0 %v3335_v46  ;;  %1915 = vmatprep.subr.bf16.mxu1 %v3346_v49  ;;  %v3413_v46 = vld [vmem:[#allocation5 + $0x488] ss:$16 sps:$4 sm:$0xff]   ;;  %v3514_v49 = vld [vmem:[#allocation7 + $0x54] ss:$8 sps:$4 sm:$0xff]  }
  0xe3   :  { %1833 = vmatprep.subr.bf16.mxu0 %v3343_v48  ;;  %v3509_v48 = vld [vmem:[#allocation7 + $0x40] ss:$8 sps:$4 sm:$0xff]  }
  0xe5   :  { %1916 = vmatpush1.bf16.msra.mxu1 %v3344_v51  ;;  %v3421_v51 = vld [vmem:[#allocation5 + $0x4cc] ss:$16 sps:$4 sm:$0xff]  }
  0xe6   :  { %1834 = vmatpush1.bf16.msra.mxu0 %v3341_v50  ;;  %1917 = vmatprep.subr.bf16.mxu1 %v3352_v53  ;;  %v3416_v50 = vld [vmem:[#allocation5 + $0x4a8] ss:$16 sps:$4 sm:$0xff]   ;;  %v3517_v53 = vld [vmem:[#allocation7 + $0x64] ss:$8 sps:$4 sm:$0xff]  }
  0xe7   :  { %1835 = vmatprep.subr.bf16.mxu0 %v3349_v52  ;;  %v3512_v52 = vld [vmem:[#allocation7 + $0x50] ss:$8 sps:$4 sm:$0xff]  }
  0xe9   :  { %1918 = vmatpush1.bf16.msra.mxu1 %v3350_v55  ;;  %v3424_v55 = vld [vmem:[#allocation5 + $0x4ec] ss:$16 sps:$4 sm:$0xff]  }
  0xea   :  { %1836 = vmatpush1.bf16.msra.mxu0 %v3347_v54  ;;  %1919 = vmatprep.subr.bf16.mxu1 %v3358_v57  ;;  %v3419_v54 = vld [vmem:[#allocation5 + $0x4c8] ss:$16 sps:$4 sm:$0xff]   ;;  %v3520_v57 = vld [vmem:[#allocation7 + $0x74] ss:$8 sps:$4 sm:$0xff]  }
  0xeb   :  { %1837 = vmatprep.subr.bf16.mxu0 %v3355_v56  ;;  %v3515_v56 = vld [vmem:[#allocation7 + $0x60] ss:$8 sps:$4 sm:$0xff]  }
  0xed   :  { %1920 = vmatpush1.bf16.msra.mxu1 %v3356_v59  ;;  %v3427_v59 = vld [vmem:[#allocation5 + $0x50c] ss:$16 sps:$4 sm:$0xff]  }
  0xee   :  { %1838 = vmatpush1.bf16.msra.mxu0 %v3353_v58  ;;  %1921 = vmatprep.subr.bf16.mxu1 %v3364_v61  ;;  %v3422_v58 = vld [vmem:[#allocation5 + $0x4e8] ss:$16 sps:$4 sm:$0xff]   ;;  %v3523_v61 = vld [vmem:[#allocation7 + $0x84] ss:$8 sps:$4 sm:$0xff]  }
  0xef   :  { %1839 = vmatprep.subr.bf16.mxu0 %v3361_v60  ;;  %v3518_v60 = vld [vmem:[#allocation7 + $0x70] ss:$8 sps:$4 sm:$0xff]  }
  0xf1   :  { %1922 = vmatpush1.bf16.msra.mxu1 %v3362_v0  ;;  %v3430_v0 = vld [vmem:[#allocation5 + $0x52c] ss:$16 sps:$4 sm:$0xff]  }
  0xf2   :  { %1840 = vmatpush1.bf16.msra.mxu0 %v3359_v62  ;;  %1923 = vmatprep.subr.bf16.mxu1 %v3370_v2  ;;  %v3425_v62 = vld [vmem:[#allocation5 + $0x508] ss:$16 sps:$4 sm:$0xff]   ;;  %v3526_v2 = vld [vmem:[#allocation7 + $0x94] ss:$8 sps:$4 sm:$0xff]  }
  0xf3   :  { %1841 = vmatprep.subr.bf16.mxu0 %v3367_v1  ;;  %v3521_v1 = vld [vmem:[#allocation7 + $0x80] ss:$8 sps:$4 sm:$0xff]  }
  0xf5   :  { %1924 = vmatpush1.bf16.msra.mxu1 %v3368_v5  ;;  %v3433_v5 = vld [vmem:[#allocation5 + $0x54c] ss:$16 sps:$4 sm:$0xff]  }
  0xf6   :  { %1842 = vmatpush1.bf16.msra.mxu0 %v3365_v4  ;;  %1925 = vmatprep.subr.bf16.mxu1 %v3376_v7  ;;  %v3428_v4 = vld [vmem:[#allocation5 + $0x528] ss:$16 sps:$4 sm:$0xff]   ;;  %v3529_v7 = vld [vmem:[#allocation7 + $0xa4] ss:$8 sps:$4 sm:$0xff]  }
  0xf7   :  { %1843 = vmatprep.subr.bf16.mxu0 %v3373_v6  ;;  %v3524_v6 = vld [vmem:[#allocation7 + $0x90] ss:$8 sps:$4 sm:$0xff]  }
  0xf9   :  { %1926 = vmatpush1.bf16.msra.mxu1 %v3374_v9  ;;  %v3436_v9 = vld [vmem:[#allocation5 + $0x56c] ss:$16 sps:$4 sm:$0xff]  }
  0xfa   :  { %1844 = vmatpush1.bf16.msra.mxu0 %v3371_v8  ;;  %1927 = vmatprep.subr.bf16.mxu1 %v3382_v11  ;;  %v3431_v8 = vld [vmem:[#allocation5 + $0x548] ss:$16 sps:$4 sm:$0xff]   ;;  %v3532_v11 = vld [vmem:[#allocation7 + $0xb4] ss:$8 sps:$4 sm:$0xff]  }
  0xfb   :  { %1845 = vmatprep.subr.bf16.mxu0 %v3379_v10  ;;  %v3527_v10 = vld [vmem:[#allocation7 + $0xa0] ss:$8 sps:$4 sm:$0xff]  }
  0xfd   :  { %1928 = vmatpush1.bf16.msra.mxu1 %v3380_v14  ;;  %v3439_v14 = vld [vmem:[#allocation5 + $0x58c] ss:$16 sps:$4 sm:$0xff]  }
  0xfe   :  { %1846 = vmatpush1.bf16.msra.mxu0 %v3377_v12  ;;  %1929 = vmatprep.subr.bf16.mxu1 %v3388_v16  ;;  %v3434_v12 = vld [vmem:[#allocation5 + $0x568] ss:$16 sps:$4 sm:$0xff]   ;;  %v3535_v16 = vld [vmem:[#allocation7 + $0xc4] ss:$8 sps:$4 sm:$0xff]  }
  0xff   :  { %1847 = vmatprep.subr.bf16.mxu0 %v3385_v15  ;;  %v3530_v15 = vld [vmem:[#allocation7 + $0xb0] ss:$8 sps:$4 sm:$0xff]  }
 0x101   :  { %1930 = vmatpush1.bf16.msra.mxu1 %v3386_v18  ;;  %v3442_v18 = vld [vmem:[#allocation5 + $0x5ac] ss:$16 sps:$4 sm:$0xff]  }
 0x102   :  { %1848 = vmatpush1.bf16.msra.mxu0 %v3383_v17  ;;  %1931 = vmatprep.subr.bf16.mxu1 %v3394_v21  ;;  %v3437_v17 = vld [vmem:[#allocation5 + $0x588] ss:$16 sps:$4 sm:$0xff]   ;;  %v3538_v21 = vld [vmem:[#allocation7 + $0xd4] ss:$8 sps:$4 sm:$0xff]  }
 0x103   :  { %1849 = vmatprep.subr.bf16.mxu0 %v3391_v20  ;;  %v3533_v20 = vld [vmem:[#allocation7 + $0xc0] ss:$8 sps:$4 sm:$0xff]  }
 0x105   :  { %1932 = vmatpush1.bf16.msra.mxu1 %v3392_v24  ;;  %v3445_v24 = vld [vmem:[#allocation5 + $0x5cc] ss:$16 sps:$4 sm:$0xff]  }
 0x106   :  { %1850 = vmatpush1.bf16.msra.mxu0 %v3389_v22  ;;  %1933 = vmatprep.subr.bf16.mxu1 %v3400_v26  ;;  %v3440_v22 = vld [vmem:[#allocation5 + $0x5a8] ss:$16 sps:$4 sm:$0xff]  }
 0x107   :  { %1851 = vmatprep.subr.bf16.mxu0 %v3397_v25  ;;  %v3536_v25 = vld [vmem:[#allocation7 + $0xd0] ss:$8 sps:$4 sm:$0xff]  }
 0x108   :  { %v3443_v26 = vld [vmem:[#allocation5 + $0x5c8] ss:$16 sps:$4 sm:$0xff]  }
 0x109   :  { %1934 = vmatpush1.bf16.msra.mxu1 %v3398_v28  ;;  %v3446_v28 = vld [vmem:[#allocation5 + $0x5e8] ss:$16 sps:$4 sm:$0xff]  }
 0x10a   :  { %1852 = vmatpush1.bf16.msra.mxu0 %v3395_v27  ;;  %1944 = vmatprep.subr.bf16.mxu1 %v3403_v29  ;;  %v3448_v27 = vld [vmem:[#allocation5 + $0x5ec] ss:$16 sps:$4 sm:$0xff]  }
 0x10b   :  { %2430 = vmatprep.subr.bf16.mxu0 %v3499_v35  ;;  %v3451_v29 = vld [vmem:[#allocation5 + $0x60c] ss:$16 sps:$4 sm:$0xff]  }
 0x10c   :  { %1936 = vmatmul.mubr.bf16.vlgmr.msra.gmra.mrb[4].mxu1 %v3846_v19  ;;  %v3503_v19 = vld [vmem:[#allocation7 + $0x20] ss:$8 sps:$4 sm:$0xff]   ;;  %v3457_v35 = vld [vmem:[#allocation5 + $0x64c] ss:$16 sps:$4 sm:$0xff]  }
 0x10d   :  { %1854 = vmatmul.mubr.bf16.vlgmr.msra.gmra.mrb[0].mxu0 %v3864_v32  ;;  %1945 = vmatpush1.bf16.msra.mxu1 %v3401_v31  ;;  %v3449_v31 = vld [vmem:[#allocation5 + $0x608] ss:$16 sps:$4 sm:$0xff]  }
 0x10e   :  { %1976 = vmatprep.mubr.bf16.mxu1 %v3849_v23  ;;  %1946 = vmatprep.subr.bf16.mxu1 %v3406_v33  ;;  %v3506_v23 = vld [vmem:[#allocation7 + $0x30] ss:$8 sps:$4 sm:$0xff]   ;;  %v3454_v33 = vld [vmem:[#allocation5 + $0x62c] ss:$16 sps:$4 sm:$0xff]  }
 0x10f   :  { %2431 = vmatpush1.bf16.msra.mxu0 %v3497_v34  ;;  %v3452_v34 = vld [vmem:[#allocation5 + $0x628] ss:$16 sps:$4 sm:$0xff]  }
 0x110   :  { %2432 = vmatprep.subr.bf16.mxu0 %v3502_v37  ;;  %v3460_v37 = vld [vmem:[#allocation5 + $0x66c] ss:$16 sps:$4 sm:$0xff]  }
 0x111   :  { %1947 = vmatpush1.bf16.msra.mxu1 %v3404_v36  ;;  %v3455_v36 = vld [vmem:[#allocation5 + $0x648] ss:$16 sps:$4 sm:$0xff]  }
 0x112   :  { %1948 = vmatprep.subr.bf16.mxu1 %v3409_v13  ;;  %v3458_v13 = vld [vmem:[#allocation5 + $0x668] ss:$16 sps:$4 sm:$0xff]  }
 0x113   :  { %2433 = vmatpush1.bf16.msra.mxu0 %v3500_v38  ;;  %v3463_v38 = vld [vmem:[#allocation5 + $0x68c] ss:$16 sps:$4 sm:$0xff]  }
 0x114   :  { %2434 = vmatprep.subr.bf16.mxu0 %v3505_v39  ;;  %v3461_v39 = vld [vmem:[#allocation5 + $0x688] ss:$16 sps:$4 sm:$0xff]  }
 0x115   :  { %1949 = vmatpush1.bf16.msra.mxu1 %v3407_v40  ;;  %v3466_v40 = vld [vmem:[#allocation5 + $0x6ac] ss:$16 sps:$4 sm:$0xff]  }
 0x116   :  { %1950 = vmatprep.subr.bf16.mxu1 %v3412_v41  ;;  %v3469_v41 = vld [vmem:[#allocation5 + $0x6cc] ss:$16 sps:$4 sm:$0xff]  }
 0x117   :  { %2435 = vmatpush1.bf16.msra.mxu0 %v3503_v19  ;;  %v3541_v19 = vld [vmem:[#allocation7 + $0xe4] ss:$8 sps:$4 sm:$0xff]  }
 0x118   :  { %2436 = vmatprep.subr.bf16.mxu0 %v3508_v44 }
 0x119   :  { %1951 = vmatpush1.bf16.msra.mxu1 %v3410_v43  ;;  %v3539_v43 = vld [vmem:[#allocation7 + $0xe0] ss:$8 sps:$4 sm:$0xff]  }
 0x11a   :  { %1952 = vmatprep.subr.bf16.mxu1 %v3415_v3 }
 0x11b   :  { %2437 = vmatpush1.bf16.msra.mxu0 %v3506_v23  ;;  %v3467_v23 = vld [vmem:[#allocation5 + $0x6c8] ss:$16 sps:$4 sm:$0xff]  }
 0x11c   :  { %2438 = vmatprep.subr.bf16.mxu0 %v3511_v45 }
 0x11d   :  { %1953 = vmatpush1.bf16.msra.mxu1 %v3413_v46  ;;  %v3472_v46 = vld [vmem:[#allocation5 + $0x6ec] ss:$16 sps:$4 sm:$0xff]  }
 0x11e   :  { %1954 = vmatprep.subr.bf16.mxu1 %v3418_v47  ;;  %v3544_v47 = vld [vmem:[#allocation7 + $0xf4] ss:$8 sps:$4 sm:$0xff]  }
 0x11f   :  { %2439 = vmatpush1.bf16.msra.mxu0 %v3509_v48  ;;  %v3542_v48 = vld [vmem:[#allocation7 + $0xf0] ss:$8 sps:$4 sm:$0xff]  }
 0x120   :  { %2440 = vmatprep.subr.bf16.mxu0 %v3514_v49  ;;  %v3470_v49 = vld [vmem:[#allocation5 + $0x6e8] ss:$16 sps:$4 sm:$0xff]  }
 0x121   :  { %1955 = vmatpush1.bf16.msra.mxu1 %v3416_v50  ;;  %v3475_v50 = vld [vmem:[#allocation5 + $0x70c] ss:$16 sps:$4 sm:$0xff]  }
 0x122   :  { %1956 = vmatprep.subr.bf16.mxu1 %v3421_v51  ;;  %v3547_v51 = vld [vmem:[#allocation7 + $0x104] ss:$8 sps:$4 sm:$0xff]  }
 0x123   :  { %2441 = vmatpush1.bf16.msra.mxu0 %v3512_v52  ;;  %v3473_v52 = vld [vmem:[#allocation5 + $0x708] ss:$16 sps:$4 sm:$0xff]  }
 0x124   :  { %2442 = vmatprep.subr.bf16.mxu0 %v3517_v53  ;;  %v3478_v53 = vld [vmem:[#allocation5 + $0x72c] ss:$16 sps:$4 sm:$0xff]  }
 0x125   :  { %1957 = vmatpush1.bf16.msra.mxu1 %v3419_v54  ;;  %v3476_v54 = vld [vmem:[#allocation5 + $0x728] ss:$16 sps:$4 sm:$0xff]  }
 0x126   :  { %1958 = vmatprep.subr.bf16.mxu1 %v3424_v55  ;;  %v3481_v55 = vld [vmem:[#allocation5 + $0x74c] ss:$16 sps:$4 sm:$0xff]  }
 0x127   :  { %2443 = vmatpush1.bf16.msra.mxu0 %v3515_v56  ;;  %v3479_v56 = vld [vmem:[#allocation5 + $0x748] ss:$16 sps:$4 sm:$0xff]  }
 0x128   :  { %2444 = vmatprep.subr.bf16.mxu0 %v3520_v57  ;;  %v3484_v57 = vld [vmem:[#allocation5 + $0x76c] ss:$16 sps:$4 sm:$0xff]  }
 0x129   :  { %1959 = vmatpush1.bf16.msra.mxu1 %v3422_v58  ;;  %v3482_v58 = vld [vmem:[#allocation5 + $0x768] ss:$16 sps:$4 sm:$0xff]  }
 0x12a   :  { %1960 = vmatprep.subr.bf16.mxu1 %v3427_v59  ;;  %v3487_v59 = vld [vmem:[#allocation5 + $0x78c] ss:$16 sps:$4 sm:$0xff]  }
 0x12b   :  { %2445 = vmatpush1.bf16.msra.mxu0 %v3518_v60  ;;  %v3485_v60 = vld [vmem:[#allocation5 + $0x788] ss:$16 sps:$4 sm:$0xff]  }
 0x12c   :  { %2446 = vmatprep.subr.bf16.mxu0 %v3523_v61  ;;  %v3490_v61 = vld [vmem:[#allocation5 + $0x7ac] ss:$16 sps:$4 sm:$0xff]  }
 0x12d   :  { %1961 = vmatpush1.bf16.msra.mxu1 %v3425_v62  ;;  %v3488_v62 = vld [vmem:[#allocation5 + $0x7a8] ss:$16 sps:$4 sm:$0xff]  }
 0x12e   :  { %1962 = vmatprep.subr.bf16.mxu1 %v3430_v0  ;;  %v3493_v0 = vld [vmem:[#allocation5 + $0x7cc] ss:$16 sps:$4 sm:$0xff]  }
 0x12f   :  { %2447 = vmatpush1.bf16.msra.mxu0 %v3521_v1  ;;  %v3491_v1 = vld [vmem:[#allocation5 + $0x7c8] ss:$16 sps:$4 sm:$0xff]  }
 0x130   :  { %2448 = vmatprep.subr.bf16.mxu0 %v3526_v2  ;;  %v3496_v2 = vld [vmem:[#allocation5 + $0x7ec] ss:$16 sps:$4 sm:$0xff]  }
 0x131   :  { %1963 = vmatpush1.bf16.msra.mxu1 %v3428_v4  ;;  %v3494_v4 = vld [vmem:[#allocation5 + $0x7e8] ss:$16 sps:$4 sm:$0xff]  }
 0x132   :  { %1964 = vmatprep.subr.bf16.mxu1 %v3433_v5  ;;  %v342_v5 = vsub.s32 0, %v3827_v42 }
 0x133   :  { %2449 = vmatpush1.bf16.msra.mxu0 %v3524_v6  ;;  %v3876_v6 = vld [vmem:[%s3913_s2] sm:$0xf] }
 0x134   :  { %2450 = vmatprep.subr.bf16.mxu0 %v3529_v7  ;;  %v346_v7 = vsub.s32 1, %v3827_v42 }
 0x135   :  { %1965 = vmatpush1.bf16.msra.mxu1 %v3431_v8  ;;  %v343_v8 = vrot.slane %v3876_v6, %v342_v5 }
 0x136   :  { %1966 = vmatprep.subr.bf16.mxu1 %v3436_v9  ;;  %v347_v9 = vrot.slane %v3876_v6, %v346_v7 }
 0x137   :  { %2451 = vmatpush1.bf16.msra.mxu0 %v3527_v10 }
 0x138   :  { %2452 = vmatprep.subr.bf16.mxu0 %v3532_v11 }
 0x139   :  { %1967 = vmatpush1.bf16.msra.mxu1 %v3434_v12 }
 0x13a   :  { %1968 = vmatprep.subr.bf16.mxu1 %v3439_v14 }
 0x13b   :  { %2453 = vmatpush1.bf16.msra.mxu0 %v3530_v15 }
 0x13c   :  { %2454 = vmatprep.subr.bf16.mxu0 %v3535_v16 }
 0x13d   :  { %1969 = vmatpush1.bf16.msra.mxu1 %v3437_v17 }
 0x13e   :  { %1970 = vmatprep.subr.bf16.mxu1 %v3442_v18 }
 0x13f   :  { %2455 = vmatpush1.bf16.msra.mxu0 %v3533_v20 }
 0x140   :  { %2456 = vmatprep.subr.bf16.mxu0 %v3538_v21 }
 0x141   :  { %1971 = vmatpush1.bf16.msra.mxu1 %v3440_v22  ;;  %v3545_v22 = vld [vmem:[#allocation7 + $0x100] ss:$8 sps:$4 sm:$0xff]  }
 0x142   :  { %1972 = vmatprep.subr.bf16.mxu1 %v3445_v24 }
 0x143   :  { %2457 = vmatpush1.bf16.msra.mxu0 %v3536_v25  ;;  %v3550_v25 = vld [vmem:[#allocation7 + $0x114] ss:$8 sps:$4 sm:$0xff]  }
 0x144   :  { %2458 = vmatprep.subr.bf16.mxu0 %v3541_v19  ;;  %v3562_v19 = vld [vmem:[#allocation7 + $0x154] ss:$8 sps:$4 sm:$0xff]  }
 0x145   :  { %1973 = vmatpush1.bf16.msra.mxu1 %v3443_v26  ;;  %v3593_v26 = vld [vmem:[#allocation8 + $0x40] sm:$0xff]  }
 0x146   :  { %1974 = vmatprep.subr.bf16.mxu1 %v3448_v27  ;;  %v3594_v27 = vld [vmem:[#allocation8] sm:$0xff]  }
 0x147   :  { %2459 = vmatpush1.bf16.msra.mxu0 %v3539_v43  ;;  %v3603_v43 = vld [vmem:[#allocation8 + $0x68] sm:$0xff]  }
 0x148   :  { %2460 = vmatprep.subr.bf16.mxu0 %v3544_v47  ;;  %v3566_v47 = vld [vmem:[#allocation7 + $0x170] ss:$8 sps:$4 sm:$0xff]  }
 0x149   :  { %1975 = vmatpush1.bf16.msra.mxu1 %v3446_v28  ;;  %v3595_v28 = vld [vmem:[#allocation8 + $0x48] sm:$0xff]  }
 0x14a   :  { %1985 = vmatprep.subr.bf16.mxu1 %v3451_v29  ;;  %v3548_v29 = vld [vmem:[#allocation7 + $0x110] ss:$8 sps:$4 sm:$0xff]  }
 0x14b   :  { %2461 = vmatpush1.bf16.msra.mxu0 %v3542_v48  ;;  %v3571_v48 = vld [vmem:[#allocation7 + $0x184] ss:$8 sps:$4 sm:$0xff]  }
 0x14c   :  { %1977 = vmatmul.mubr.bf16.vlgmr.msra.gmra.mrb[4].mxu1 %v3836_v63  ;;  %v3464_v63 = vld [vmem:[#allocation5 + $0x6a8] ss:$16 sps:$4 sm:$0xff]   ;;  %2471 = vmatprep.subr.bf16.mxu0 %v3547_v51 }
 0x14d   :  { %1986 = vmatpush1.bf16.msra.mxu1 %v3449_v31  ;;  %2017 = vmatprep.mubr.bf16.mxu1 %v3856_v30  ;;  %v3553_v31 = vld [vmem:[#allocation7 + $0x124] ss:$8 sps:$4 sm:$0xff]   ;;  %v3572_v51 = vld [vmem:[#allocation7 + $0x190] ss:$8 sps:$4 sm:$0xff]  }
 0x14e   :  { %1987 = vmatprep.subr.bf16.mxu1 %v3454_v33  ;;  %v3596_v33 = vld [vmem:[#allocation8 + $0x8] sm:$0xff]  }
 0x151   :  { %1988 = vmatpush1.bf16.msra.mxu1 %v3452_v34  ;;  %v3597_v34 = vld [vmem:[#allocation8 + $0x50] sm:$0xff]  }
 0x152   :  { %1989 = vmatprep.subr.bf16.mxu1 %v3457_v35  ;;  %v3551_v35 = vld [vmem:[#allocation7 + $0x120] ss:$8 sps:$4 sm:$0xff]  }
 0x155   :  { %1990 = vmatpush1.bf16.msra.mxu1 %v3455_v36  ;;  %v3556_v36 = vld [vmem:[#allocation7 + $0x134] ss:$8 sps:$4 sm:$0xff]  }
 0x156   :  { %1991 = vmatprep.subr.bf16.mxu1 %v3460_v37  ;;  %v3598_v37 = vld [vmem:[#allocation8 + $0x10] sm:$0xff]  }
 0x159   :  { %1992 = vmatpush1.bf16.msra.mxu1 %v3458_v13  ;;  %v3599_v13 = vld [vmem:[#allocation8 + $0x58] sm:$0xff]  }
 0x15a   :  { %1993 = vmatprep.subr.bf16.mxu1 %v3463_v38  ;;  %v3554_v38 = vld [vmem:[#allocation7 + $0x130] ss:$8 sps:$4 sm:$0xff]  }
 0x15d   :  { %1994 = vmatpush1.bf16.msra.mxu1 %v3461_v39  ;;  %v3559_v39 = vld [vmem:[#allocation7 + $0x144] ss:$8 sps:$4 sm:$0xff]  }
 0x15e   :  { %1995 = vmatprep.subr.bf16.mxu1 %v3466_v40  ;;  %v3600_v40 = vld [vmem:[#allocation8 + $0x18] sm:$0xff]  }
 0x15f   :  { %v1732_v30 = vpop.f32.mrb[0].mxu1 }
 0x160   :  { %v1734_v3 = vpop.f32.mrb[1].mxu1  ;;  %v1733_v10 = vadd.f32 %v1732_v30, %v343_v8  ;;  %v3602_v30 = vld [vmem:[#allocation8 + $0x20] sm:$0xff]  }
 0x161   :  { %v1736_v44 = vpop.f32.mrb[2].mxu1  ;;  %1996 = vmatpush1.bf16.msra.mxu1 %v3464_v63  ;;  %v1735_v11 = vadd.f32 %v1734_v3, %v347_v9  ;;  %v3601_v63 = vld [vmem:[#allocation8 + $0x60] sm:$0xff]   ;;  %v3560_v3 = vld [vmem:[#allocation7 + $0x150] ss:$8 sps:$4 sm:$0xff]  }
 0x162   :  { %v1737_v45 = vpop.f32.mrb[3].mxu1  ;;  %1997 = vmatprep.subr.bf16.mxu1 %v3469_v41  ;;  %v3557_v41 = vld [vmem:[#allocation7 + $0x140] ss:$8 sps:$4 sm:$0xff]   ;;  %v3565_v44 = vld [vmem:[#allocation7 + $0x164] ss:$8 sps:$4 sm:$0xff]  }
 0x163   :  { %v3563_v45 = vld [vmem:[#allocation7 + $0x160] ss:$8 sps:$4 sm:$0xff]  }
 0x165   :  { %1998 = vmatpush1.bf16.msra.mxu1 %v3467_v23  ;;  %v3604_v23 = vld [vmem:[#allocation8 + $0x28] sm:$0xff]  }
 0x166   :  { %1999 = vmatprep.subr.bf16.mxu1 %v3472_v46  ;;  %v3568_v46 = vld [vmem:[#allocation7 + $0x174] ss:$8 sps:$4 sm:$0xff]  }
 0x169   :  { %2000 = vmatpush1.bf16.msra.mxu1 %v3470_v49  ;;  %v3569_v49 = vld [vmem:[#allocation7 + $0x180] ss:$8 sps:$4 sm:$0xff]  }
 0x16a   :  { %2001 = vmatprep.subr.bf16.mxu1 %v3475_v50  ;;  %v3574_v50 = vld [vmem:[#allocation7 + $0x194] ss:$8 sps:$4 sm:$0xff]  }
 0x16d   :  { %2002 = vmatpush1.bf16.msra.mxu1 %v3473_v52  ;;  %v3577_v52 = vld [vmem:[#allocation7 + $0x1a4] ss:$8 sps:$4 sm:$0xff]  }
 0x16e   :  { %2003 = vmatprep.subr.bf16.mxu1 %v3478_v53  ;;  %v3575_v53 = vld [vmem:[#allocation7 + $0x1a0] ss:$8 sps:$4 sm:$0xff]  }
 0x171   :  { %2004 = vmatpush1.bf16.msra.mxu1 %v3476_v54  ;;  %v3580_v54 = vld [vmem:[#allocation7 + $0x1b4] ss:$8 sps:$4 sm:$0xff]  }
 0x172   :  { %2005 = vmatprep.subr.bf16.mxu1 %v3481_v55  ;;  %v3578_v55 = vld [vmem:[#allocation7 + $0x1b0] ss:$8 sps:$4 sm:$0xff]  }
 0x175   :  { %2006 = vmatpush1.bf16.msra.mxu1 %v3479_v56  ;;  %v3583_v56 = vld [vmem:[#allocation7 + $0x1c4] ss:$8 sps:$4 sm:$0xff]  }
 0x176   :  { %2007 = vmatprep.subr.bf16.mxu1 %v3484_v57  ;;  %v3581_v57 = vld [vmem:[#allocation7 + $0x1c0] ss:$8 sps:$4 sm:$0xff]  }
 0x179   :  { %2008 = vmatpush1.bf16.msra.mxu1 %v3482_v58  ;;  %v3586_v58 = vld [vmem:[#allocation7 + $0x1d4] ss:$8 sps:$4 sm:$0xff]  }
 0x17a   :  { %2009 = vmatprep.subr.bf16.mxu1 %v3487_v59  ;;  %v3584_v59 = vld [vmem:[#allocation7 + $0x1d0] ss:$8 sps:$4 sm:$0xff]  }
 0x17d   :  { %2010 = vmatpush1.bf16.msra.mxu1 %v3485_v60  ;;  %v3589_v60 = vld [vmem:[#allocation7 + $0x1e4] ss:$8 sps:$4 sm:$0xff]  }
 0x17e   :  { %2011 = vmatprep.subr.bf16.mxu1 %v3490_v61  ;;  %v3587_v61 = vld [vmem:[#allocation7 + $0x1e0] ss:$8 sps:$4 sm:$0xff]  }
 0x181   :  { %2012 = vmatpush1.bf16.msra.mxu1 %v3488_v62  ;;  %v3592_v62 = vld [vmem:[#allocation7 + $0x1f4] ss:$8 sps:$4 sm:$0xff]  }
 0x182   :  { %2013 = vmatprep.subr.bf16.mxu1 %v3493_v0  ;;  %v3590_v0 = vld [vmem:[#allocation7 + $0x1f0] ss:$8 sps:$4 sm:$0xff]  }
 0x185   :  { %2014 = vmatpush1.bf16.msra.mxu1 %v3491_v1  ;;  %v350_v1 = vsub.s32 2, %v3827_v42 }
 0x186   :  { %2015 = vmatprep.subr.bf16.mxu1 %v3496_v2  ;;  %v354_v2 = vsub.s32 3, %v3827_v42 }
 0x188   :  { %v355_v8 = vrot.slane %v3876_v6, %v354_v2 }
 0x189   :  { %2016 = vmatpush1.bf16.msra.mxu1 %v3494_v4  ;;  %v351_v4 = vrot.slane %v3876_v6, %v350_v1  ;;  %v2098_v6 = vld [vmem:[%s3915_s4] sm:$0x3] }
 0x18a   :  { %3046 = vmatprep.subr.bf16.mxu1 %v3593_v26  ;;  %v2107_v26 = vrot.slane %v2098_v6, %v346_v7 }
 0x18c   :  { %2018 = vmatmul.mubr.bf16.vlgmr.msra.gmra.mrb[4].mxu1 %v3864_v32 }
 0x18d   :  { %3047 = vmatpush3.bf16.msra.mxu1 %v3594_v27 }
 0x18e   :  { %3048 = vmatprep.subr.bf16.mxu1 %v3595_v28 }
 0x191   :  { %3049 = vmatpush3.bf16.msra.mxu1 %v3596_v33 }
 0x192   :  { %3050 = vmatprep.subr.bf16.mxu1 %v3597_v34 }
 0x195   :  { %3051 = vmatpush3.bf16.msra.mxu1 %v3598_v37 }
 0x196   :  { %3052 = vmatprep.subr.bf16.mxu1 %v3599_v13 }
 0x199   :  { %3053 = vmatpush3.bf16.msra.mxu1 %v3600_v40 }
 0x19a   :  { %3054 = vmatprep.subr.bf16.mxu1 %v3601_v63 }
 0x19d   :  { %3055 = vmatpush3.bf16.msra.mxu1 %v3602_v30 }
 0x19e   :  { %3056 = vmatprep.subr.bf16.mxu1 %v3603_v43 }
 0x1a1   :  { %3057 = vmatpush3.bf16.msra.mxu1 %v3604_v23 }
 0x1e0   :  { %v1855_v32 = vpop.f32.mrb[0].mxu0 }
 0x1e1   :  { %v3069_v12 = vadd.f32 %v1855_v32, %v1733_v10  ;;  %v1857_v14 = vpop.f32.mrb[1].mxu0 }
 0x1e2   :  { %v3071_v15 = vadd.f32 %v1857_v14, %v1735_v11  ;;  %v1859_v16 = vpop.f32.mrb[2].mxu0 }
 0x1e3   :  { %v2026_v17 = vmax.f32 %v3069_v12, 0.0  ;;  %v1860_v18 = vpop.f32.mrb[3].mxu0 }
 0x1e4   :  { %v2027_v20 = vmax.f32 %v3071_v15, 0.0 }
 0x1e5   :  { %v2030_v24 = vpack.c.bf16 %v2026_v17, %v2026_v17 }
 0x1e6   :  { %v2031_v21 = vpack.c.bf16 %v2027_v20, %v2027_v20  ;;  %v3605_v20 = vld [vmem:[#allocation8 + $0x70] sm:$0xff]  }
 0x1e7   :  { %3058 = vmatprep.subr.bf16.mxu1 %v3605_v20 }
 0x1e8   :  { %2462 = vmatprep.mubr.bf16.mxu0 %v2031_v21  ;;  %v3606_v21 = vld [vmem:[#allocation8 + $0x30] sm:$0xff]  }
 0x1e9   :  { %2463 = vmatmul.mubr.bf16.vlgmr.msra.gmra.mrb[4].mxu0 %v2030_v24  ;;  %3059 = vmatpush3.bf16.msra.mxu1 %v3606_v21  ;;  %v3608_v24 = vld [vmem:[#allocation8 + $0x38] sm:$0xff]  }
 0x1ea   :  { %2472 = vmatpush1.bf16.msra.mxu0 %v3545_v22  ;;  %v3607_v22 = vld [vmem:[#allocation8 + $0x78] sm:$0xff]  }
 0x1eb   :  { %2473 = vmatprep.subr.bf16.mxu0 %v3550_v25  ;;  %3060 = vmatprep.subr.bf16.mxu1 %v3607_v22  ;;  %v2103_v25 = vrot.slane %v2098_v6, %v342_v5  ;;  %v3029_v5 = vld [vmem:[%s3917_s6] ss:$0 sm:$0xff] }
 0x1ed   :  { %3061 = vmatpush3.bf16.msra.mxu1 %v3608_v24 }
 0x1ee   :  { %2474 = vmatpush1.bf16.msra.mxu0 %v3548_v29 }
 0x1ef   :  { %2475 = vmatprep.subr.bf16.mxu0 %v3553_v31 }
 0x1f2   :  { %2476 = vmatpush1.bf16.msra.mxu0 %v3551_v35 }
 0x1f3   :  { %2477 = vmatprep.subr.bf16.mxu0 %v3556_v36 }
 0x1f6   :  { %2478 = vmatpush1.bf16.msra.mxu0 %v3554_v38 }
 0x1f7   :  { %2479 = vmatprep.subr.bf16.mxu0 %v3559_v39 }
 0x1fa   :  { %2480 = vmatpush1.bf16.msra.mxu0 %v3557_v41 }
 0x1fb   :  { %2481 = vmatprep.subr.bf16.mxu0 %v3562_v19 }
 0x1fe   :  { %2482 = vmatpush1.bf16.msra.mxu0 %v3560_v3 }
 0x1ff   :  { %2483 = vmatprep.subr.bf16.mxu0 %v3565_v44 }
 0x202   :  { %2484 = vmatpush1.bf16.msra.mxu0 %v3563_v45 }
 0x203   :  { %2485 = vmatprep.subr.bf16.mxu0 %v3568_v46 }
 0x206   :  { %2486 = vmatpush1.bf16.msra.mxu0 %v3566_v47 }
 0x207   :  { %2487 = vmatprep.subr.bf16.mxu0 %v3571_v48 }
 0x20a   :  { %2488 = vmatpush1.bf16.msra.mxu0 %v3569_v49 }
 0x20b   :  { %2489 = vmatprep.subr.bf16.mxu0 %v3574_v50 }
 0x20e   :  { %2490 = vmatpush1.bf16.msra.mxu0 %v3572_v51 }
 0x20f   :  { %2491 = vmatprep.subr.bf16.mxu0 %v3577_v52 }
 0x212   :  { %2492 = vmatpush1.bf16.msra.mxu0 %v3575_v53 }
 0x213   :  { %2493 = vmatprep.subr.bf16.mxu0 %v3580_v54 }
 0x216   :  { %2494 = vmatpush1.bf16.msra.mxu0 %v3578_v55 }
 0x217   :  { %2495 = vmatprep.subr.bf16.mxu0 %v3583_v56 }
 0x21a   :  { %2496 = vmatpush1.bf16.msra.mxu0 %v3581_v57 }
 0x21b   :  { %2497 = vmatprep.subr.bf16.mxu0 %v3586_v58 }
 0x21e   :  { %2498 = vmatpush1.bf16.msra.mxu0 %v3584_v59 }
 0x21f   :  { %2499 = vmatprep.subr.bf16.mxu0 %v3589_v60 }
 0x222   :  { %2500 = vmatpush1.bf16.msra.mxu0 %v3587_v61 }
 0x223   :  { %2501 = vmatprep.subr.bf16.mxu0 %v3592_v62 }
 0x226   :  { %2502 = vmatpush1.bf16.msra.mxu0 %v3590_v0 }
 0x25f   :  { %v2019_v9 = vpop.f32.mrb[4].mxu1 }
 0x260   :  { %v3072_v10 = vadd.f32 %v2019_v9, %v351_v4  ;;  %v2021_v11 = vpop.f32.mrb[5].mxu1 }
 0x261   :  { %v3073_v32 = vadd.f32 %v2021_v11, %v355_v8  ;;  %v2023_v12 = vpop.f32.mrb[6].mxu1 }
 0x262   :  { %v2028_v14 = vmax.f32 %v3072_v10, 0.0  ;;  %v2024_v15 = vpop.f32.mrb[7].mxu1 }
 0x263   :  { %v2029_v16 = vmax.f32 %v3073_v32, 0.0 }
 0x264   :  { %v2032_v18 = vpack.c.bf16 %v2028_v14, %v2028_v14 }
 0x265   :  { %v2033_v17 = vpack.c.bf16 %v2029_v16, %v2029_v16 }
 0x267   :  { %2503 = vmatprep.mubr.bf16.mxu0 %v2033_v17 }
 0x268   :  { %2504 = vmatmul.mubr.bf16.vlgmr.msra.gmra.mrb[4].mxu0 %v2032_v18 }
 0x33b   :  { %v2505_v27 = vpop.f32.mrb[4].mxu0 }
 0x33c   :  { %v3074_v28 = vadd.f32 %v2505_v27, %v2103_v25  ;;  %v2507_v29 = vpop.f32.mrb[5].mxu0 }
 0x33d   :  { %v3075_v31 = vadd.f32 %v2507_v29, %v2107_v26  ;;  %v2509_v33 = vpop.f32.mrb[6].mxu0 }
 0x33e   :  { %v2512_v34 = vmax.f32 %v3074_v28, 0.0  ;;  %v2510_v35 = vpop.f32.mrb[7].mxu0 }
 0x33f   :  { %v2513_v36 = vmax.f32 %v3075_v31, 0.0 }
 0x340   :  { %v2514_v13 = vpack.c.bf16 %v2512_v34, %v2512_v34 }
 0x341   :  { %v2515_v37 = vpack.c.bf16 %v2513_v36, %v2513_v36 }
 0x343   :  { %2683 = vmatprep.mubr.bf16.mxu1 %v2515_v37 }
 0x344   :  { %2684 = vmatmul.mubr.bf16.vlgmr.msra.gmra.mrb[8].mxu1 %v2514_v13 }
 0x417   :  { %v3062_v38 = vpop.f32.mrb[8].mxu1 }
 0x418   :  { %v3063_v39 = vpop.f32.mrb[9].mxu1 }
 0x419   :  { %v3064_v42 = vadd.f32 %v3063_v39, %v3062_v38  ;;  %v3065_v7 = vpop.f32.mrb[10].mxu1 }
 0x41a   :  { %v3066_v40 = vpop.f32.mrb[11].mxu1 }
 0x41b   :  { %v2686_v63 = vadd.f32 %v3064_v42, %v3029_v5 }
 0x41d   :  { %2691 = vst [vmem:[#allocation10] sm:$0x3] %v2686_v63 }
 0x41e   :  { %3708 = shalt.err (!%p3705_p8)
}
 0x41f   :  { %s3709_s6 = scalar_lea.hbm %s3918_s7, 32 }
 0x420   :  { %p3710_p9 = scmp.ne.s32.totalorder %s3918_s7, %s3709_s6  ;;  %p3713_p10 = scmp.lt.u32.totalorder %s3709_s6, %s3918_s7 }
 0x422   :  { %p3715_p11 = pnand %p3713_p10, %p3710_p9 }
 0x424   :  { %3718 = shalt.err (!%p3715_p11)
}
 0x425   :  { %2701 = dma.vmem_to_hbm [thread:$0]  %s2699_s9, 32, %s3918_s7, [#allocation4]  }
 0x426   :  { %3725 = dma.done.wait [#allocation4], 32  }
 0x427   :  { %3726 = vsyncadd [#allocation4], 4294967264 }
 0x428   :  { %2705 = vsyncpa [#allocation3], 1 }
 0x429   :  { %2706 = vsyncpa [#allocation6], 1 }
 0x42a   :  { %2707 = vsyncpa [#allocation9], 1 }
 0x42b   :  { %2708 = vsyncpa [#allocation4], 1 }

</bundles_post_ra>
